<compile_context>
chip_gen: v6e
topology: v6e:2x2x1
jax: 0.10.0
libtpu: 0.0.40
codegen_flags: <defaults>
</compile_context>

<pallas_src>
import jax
import jax.numpy as jnp
from jax import lax
from jax.experimental import pallas as pl
from jax.experimental.pallas import tpu as pltpu

EPS = 1e-3  # both BatchNorm2d layers use eps=0.001


def _round_up(v, m):
    return (v + m - 1) // m * m


def make_fused_kernel(H, W, Cin, Cmid, Ho, Wo, Whp):
    n1 = float(H * W)    # real pixel count for BN #1 (width-pad rows contribute 0 to the sums)
    n2 = float(Ho * Wo)  # pixel count for BN #2

    # tap index -> (parity, start offset) into the halo-padded parity planes:
    #   k = 0 -> (parity 1, offset 0)   (offset 0 hits the zero halo row/col)
    #   k = 1 -> (parity 0, offset 1)
    #   k = 2 -> (parity 1, offset 1)
    TAP = ((1, 0), (0, 1), (1, 1))

    def kernel(x_ref, w1_ref, g1_ref, b1_ref, w2_ref, g2_ref, b2_ref,
               out_ref, pp00, pp01, pp10, pp11):
        planes = ((pp00, pp01), (pp10, pp11))           # planes[row_parity][col_parity]

        # ---- 1x1 conv: one MXU matmul over all (W-parity-split, width-padded) pixels ----
        x = x_ref[...]                                                     # [2*H*Whp, Cin]
        y = jnp.dot(x, w1_ref[...], preferred_element_type=jnp.float32)   # [2*H*Whp, Cmid]

        # ---- BatchNorm #1 (training-mode batch stats), folded into one affine + ReLU pass ----
        s1 = jnp.sum(y, axis=0, keepdims=True)                             # [1, Cmid]
        s2 = jnp.sum(y * y, axis=0, keepdims=True)                         # [1, Cmid]
        mean1 = s1 / n1
        var1 = s2 / n1 - mean1 * mean1
        scale1 = g1_ref[...] * lax.rsqrt(var1 + EPS)
        shift1 = b1_ref[...] - mean1 * scale1
        y = jnp.maximum(y * scale1 + shift1, 0.0)                          # BN + ReLU, one pass

        # ---- split into 4 (row, col) parity planes with a zero halo row/col ----
        # y row order is ((s*H + i)*Whp + b); Whp % 8 == 0 so this reshape is a pure retile.
        v5 = y.reshape(2, Ho, 2, Whp, Cmid)            # v5[s, a, r, b, :] = y_spatial[2a+r, 2b+s]
        zero_row = jnp.zeros((1, Whp + 1, Cmid), jnp.float32)
        zero_col = jnp.zeros((Ho + 1, 1, Cmid), jnp.float32)
        for r in range(2):
            for s in range(2):
                pr = planes[r][s]
                pr[0:1, :, :] = zero_row               # top halo (padded row 0)
                pr[:, 0:1, :] = zero_col               # left halo (padded col 0)
                pr[1:Ho + 1, 1:Whp + 1, :] = v5[s, :, r, :, :]

        # ---- depthwise 3x3 / stride-2 conv: 9 whole-plane contiguous shifted slices ----
        w2 = w2_ref[...]                                                   # [9, Cmid]
        acc = jnp.zeros((Ho, Wo, Cmid), jnp.float32)
        for kh in range(3):
            r, a0 = TAP[kh]
            for kw in range(3):
                s, b0 = TAP[kw]
                t = kh * 3 + kw
                tap = planes[r][s][a0:a0 + Ho, b0:b0 + Wo, :]              # [Ho, Wo, Cmid]
                acc = acc + tap * w2[t:t + 1, :]

        # ---- BatchNorm #2 (training-mode batch stats), single affine pass ----
        t1 = jnp.sum(jnp.sum(acc, axis=0, keepdims=True), axis=1, keepdims=True)        # [1,1,C]
        t2 = jnp.sum(jnp.sum(acc * acc, axis=0, keepdims=True), axis=1, keepdims=True)  # [1,1,C]
        mean2 = t1 / n2
        var2 = t2 / n2 - mean2 * mean2
        scale2 = g2_ref[...].reshape(1, 1, Cmid) * lax.rsqrt(var2 + EPS)
        shift2 = b2_ref[...].reshape(1, 1, Cmid) - mean2 * scale2

        out_ref[...] = acc * scale2 + shift2

    return kernel


def fused_forward(x_nchw, w1_oihw, g1, b1, w2_oihw, g2, b2):
    """x_nchw: [1, 16, H, W] -> [1, 72, H//2, W//2] (matches the PyTorch module, training mode)."""
    N, Cin, H, W = x_nchw.shape
    assert N == 1, "module is defined for batch size 1"
    assert H % 2 == 0 and W % 2 == 0
    Cmid = w1_oihw.shape[0]
    Ho, Wo = H // 2, W // 2
    Wh = W // 2
    Whp = _round_up(Wh, 8)       # pad half-width so the in-kernel reshape is a clean retile

    # --- layout glue (plain XLA ops): NCHW -> W-parity-split, channels-last rows ---
    x_hwc = jnp.transpose(x_nchw[0], (1, 2, 0))                              # [H, W, Cin]
    x_par = jnp.transpose(x_hwc.reshape(H, Wh, 2, Cin), (2, 0, 1, 3))        # [2, H, Wh, Cin]
    x_par = jnp.pad(x_par, ((0, 0), (0, 0), (0, Whp - Wh), (0, 0)))          # zero width pad
    x_in = x_par.reshape(2 * H * Whp, Cin)                                   # [2*H*Whp, Cin]

    w1_k = jnp.transpose(w1_oihw[:, :, 0, 0], (1, 0))                        # [Cin, Cmid]
    w2_k = jnp.transpose(w2_oihw[:, 0, :, :], (1, 2, 0)).reshape(9, Cmid)    # [9, Cmid]

    out_hwc = pl.pallas_call(
        make_fused_kernel(H, W, Cin, Cmid, Ho, Wo, Whp),
        out_shape=jax.ShapeDtypeStruct((Ho, Wo, Cmid), jnp.float32),
        grid_spec=pltpu.PrefetchScalarGridSpec(
            num_scalar_prefetch=0,
            grid=(1,),
            in_specs=[
                pl.BlockSpec((2 * H * Whp, Cin), lambda i: (0, 0)),
                pl.BlockSpec((Cin, Cmid), lambda i: (0, 0)),
                pl.BlockSpec((1, Cmid), lambda i: (0, 0)),
                pl.BlockSpec((1, Cmid), lambda i: (0, 0)),
                pl.BlockSpec((9, Cmid), lambda i: (0, 0)),
                pl.BlockSpec((1, Cmid), lambda i: (0, 0)),
                pl.BlockSpec((1, Cmid), lambda i: (0, 0)),
            ],
            out_specs=pl.BlockSpec((Ho, Wo, Cmid), lambda i: (0, 0, 0)),
            scratch_shapes=[pltpu.VMEM((Ho + 1, Whp + 1, Cmid), jnp.float32)
                            for _ in range(4)],
        ),
        compiler_params=pltpu.CompilerParams(dimension_semantics=("arbitrary",)),
    )(x_in, w1_k, g1.reshape(1, Cmid), b1.reshape(1, Cmid),
      w2_k, g2.reshape(1, Cmid), b2.reshape(1, Cmid))

    return jnp.transpose(out_hwc, (2, 0, 1))[None]                           # [1, Cmid, Ho, Wo]


def reference_forward(x, w1, g1, b1, w2, g2, b2):
    """Pure-JAX reference matching the PyTorch module in (default) training mode."""
    y = lax.conv_general_dilated(x, w1, (1, 1), 'VALID',
                                 dimension_numbers=('NCHW', 'OIHW', 'NCHW'))
    m = y.mean(axis=(0, 2, 3), keepdims=True)
    v = ((y - m) ** 2).mean(axis=(0, 2, 3), keepdims=True)
    y = (y - m) / jnp.sqrt(v + EPS) * g1[None, :, None, None] + b1[None, :, None, None]
    y = jnp.maximum(y, 0.0)
    z = lax.conv_general_dilated(y, w2, (2, 2), ((1, 1), (1, 1)),
                                 dimension_numbers=('NCHW', 'OIHW', 'NCHW'),
                                 feature_group_count=w2.shape[0])
    m2 = z.mean(axis=(0, 2, 3), keepdims=True)
    v2 = ((z - m2) ** 2).mean(axis=(0, 2, 3), keepdims=True)
    return (z - m2) / jnp.sqrt(v2 + EPS) * g2[None, :, None, None] + b2[None, :, None, None]


if __name__ == "__main__":
    Cin, Cmid = 16, 72          # fixed by the module
    H = W = 16                  # small spatial size (module uses 56x56; semantics identical)

    key = jax.random.PRNGKey(0)
    kx, k1, k2, k3, k4, k5, k6 = jax.random.split(key, 7)

    x = jax.random.normal(kx, (1, Cin, H, W), jnp.float32)
    w1 = jax.random.normal(k1, (Cmid, Cin, 1, 1), jnp.float32) * 0.1   # Conv2d(16,72,1x1) weight
    w2 = jax.random.normal(k2, (Cmid, 1, 3, 3), jnp.float32) * 0.1     # depthwise Conv2d weight
    g1 = 1.0 + 0.1 * jax.random.normal(k3, (Cmid,), jnp.float32)       # BN3 gamma
    b1 = 0.1 * jax.random.normal(k4, (Cmid,), jnp.float32)             # BN3 beta
    g2 = 1.0 + 0.1 * jax.random.normal(k5, (Cmid,), jnp.float32)       # BN4 gamma
    b2 = 0.1 * jax.random.normal(k6, (Cmid,), jnp.float32)             # BN4 beta

    out = fused_forward(x, w1, g1, b1, w2, g2, b2)
    out = jax.block_until_ready(out)

    ref = reference_forward(x, w1, g1, b1, w2, g2, b2)
    assert out.shape == ref.shape == (1, Cmid, H // 2, W // 2), out.shape
    assert jnp.all(jnp.isfinite(out))
    assert jnp.allclose(out, ref, atol=2e-3, rtol=2e-3), float(jnp.max(jnp.abs(out - ref)))

    print("KERNEL_OK")
</pallas_src>

<mosaic_0001>
module attributes {stable_mosaic.version = 11 : i64} {
  func.func @kernel(%arg0: i32, %arg1: memref<256x16xf32, #tpu.memory_space<vmem>>, %arg2: memref<16x72xf32, #tpu.memory_space<vmem>>, %arg3: memref<1x72xf32, #tpu.memory_space<vmem>>, %arg4: memref<1x72xf32, #tpu.memory_space<vmem>>, %arg5: memref<9x72xf32, #tpu.memory_space<vmem>>, %arg6: memref<1x72xf32, #tpu.memory_space<vmem>>, %arg7: memref<1x72xf32, #tpu.memory_space<vmem>>, %arg8: memref<8x8x72xf32, #tpu.memory_space<vmem>>, %arg9: memref<9x9x72xf32, #tpu.memory_space<vmem>>, %arg10: memref<9x9x72xf32, #tpu.memory_space<vmem>>, %arg11: memref<9x9x72xf32, #tpu.memory_space<vmem>>, %arg12: memref<9x9x72xf32, #tpu.memory_space<vmem>>) attributes {dimension_semantics = [#tpu.dimension_semantics<arbitrary>], iteration_bounds = array<i64: 1>, scalar_prefetch = 0 : i64, scratch_operands = 4 : i64, tpu.core_type = #tpu.core_type<tc>, window_params = [{pipeline_mode = #tpu.pipeline_mode<synchronous>, transform_indices = @transform_0, window_bounds = array<i64: 256, 16>}, {pipeline_mode = #tpu.pipeline_mode<synchronous>, transform_indices = @transform_1, window_bounds = array<i64: 16, 72>}, {pipeline_mode = #tpu.pipeline_mode<synchronous>, transform_indices = @transform_2, window_bounds = array<i64: 1, 72>}, {pipeline_mode = #tpu.pipeline_mode<synchronous>, transform_indices = @transform_3, window_bounds = array<i64: 1, 72>}, {pipeline_mode = #tpu.pipeline_mode<synchronous>, transform_indices = @transform_4, window_bounds = array<i64: 9, 72>}, {pipeline_mode = #tpu.pipeline_mode<synchronous>, transform_indices = @transform_5, window_bounds = array<i64: 1, 72>}, {pipeline_mode = #tpu.pipeline_mode<synchronous>, transform_indices = @transform_6, window_bounds = array<i64: 1, 72>}, {pipeline_mode = #tpu.pipeline_mode<synchronous>, transform_indices = @transform_7, window_bounds = array<i64: 8, 8, 72>}]} {
    %c0 = arith.constant 0 : index
    %c0_0 = arith.constant 0 : index
    %0 = vector.load %arg1[%c0, %c0_0] : memref<256x16xf32, #tpu.memory_space<vmem>>, vector<256x16xf32>
    %c0_1 = arith.constant 0 : index
    %c0_2 = arith.constant 0 : index
    %1 = vector.load %arg2[%c0_1, %c0_2] : memref<16x72xf32, #tpu.memory_space<vmem>>, vector<16x72xf32>
    %cst = arith.constant dense<0.000000e+00> : vector<256x72xf32>
    %2 = tpu.matmul %0, %1, %cst {dimension_numbers = #tpu.dot_dimension_numbers<[1], [0], [0], [1], [0, 0, 1, 1], [], []>} : vector<256x16xf32>, vector<16x72xf32>, vector<256x72xf32> -> vector<256x72xf32>
    %cst_3 = arith.constant dense<0.000000e+00> : vector<72xf32>
    %3 = vector.multi_reduction <add>, %2, %cst_3 [0] : vector<256x72xf32> to vector<72xf32>
    %4 = vector.shape_cast %3 : vector<72xf32> to vector<1x72xf32>
    %5 = arith.mulf %2, %2 : vector<256x72xf32>
    %cst_4 = arith.constant dense<0.000000e+00> : vector<72xf32>
    %6 = vector.multi_reduction <add>, %5, %cst_4 [0] : vector<256x72xf32> to vector<72xf32>
    %7 = vector.shape_cast %6 : vector<72xf32> to vector<1x72xf32>
    %cst_5 = arith.constant 2.560000e+02 : f32
    %8 = vector.broadcast %cst_5 : f32 to vector<1x72xf32>
    %9 = arith.divf %4, %8 : vector<1x72xf32>
    %cst_6 = arith.constant 2.560000e+02 : f32
    %10 = vector.broadcast %cst_6 : f32 to vector<1x72xf32>
    %11 = arith.divf %7, %10 : vector<1x72xf32>
    %12 = arith.mulf %9, %9 : vector<1x72xf32>
    %13 = arith.subf %11, %12 : vector<1x72xf32>
    %c0_7 = arith.constant 0 : index
    %c0_8 = arith.constant 0 : index
    %14 = vector.load %arg3[%c0_7, %c0_8] : memref<1x72xf32, #tpu.memory_space<vmem>>, vector<1x72xf32>
    %cst_9 = arith.constant 1.000000e-03 : f32
    %15 = vector.broadcast %cst_9 : f32 to vector<1x72xf32>
    %16 = arith.addf %13, %15 : vector<1x72xf32>
    %17 = math.rsqrt %16 : vector<1x72xf32>
    %18 = arith.mulf %14, %17 : vector<1x72xf32>
    %c0_10 = arith.constant 0 : index
    %c0_11 = arith.constant 0 : index
    %19 = vector.load %arg4[%c0_10, %c0_11] : memref<1x72xf32, #tpu.memory_space<vmem>>, vector<1x72xf32>
    %20 = arith.mulf %9, %18 : vector<1x72xf32>
    %21 = arith.subf %19, %20 : vector<1x72xf32>
    %22 = vector.broadcast %18 : vector<1x72xf32> to vector<256x72xf32>
    %23 = arith.mulf %2, %22 : vector<256x72xf32>
    %24 = vector.broadcast %21 : vector<1x72xf32> to vector<256x72xf32>
    %25 = arith.addf %23, %24 : vector<256x72xf32>
    %cst_12 = arith.constant 0.000000e+00 : f32
    %26 = vector.broadcast %cst_12 : f32 to vector<256x72xf32>
    %27 = arith.maximumf %25, %26 : vector<256x72xf32>
    %28 = vector.shape_cast %27 : vector<256x72xf32> to vector<2x8x2x8x72xf32>
    %cst_13 = arith.constant 0.000000e+00 : f32
    %29 = vector.broadcast %cst_13 : f32 to vector<1x9x72xf32>
    %cst_14 = arith.constant 0.000000e+00 : f32
    %30 = vector.broadcast %cst_14 : f32 to vector<9x1x72xf32>
    %c0_15 = arith.constant 0 : index
    %c0_16 = arith.constant 0 : index
    %c0_17 = arith.constant 0 : index
    %31 = vector.load %arg9[%c0_15, %c0_16, %c0_17] : memref<9x9x72xf32, #tpu.memory_space<vmem>>, vector<1x9x72xf32>
    tpu.vector_store %arg9[%c0_15, %c0_16, %c0_17], %29 {strides = array<i32>} : memref<9x9x72xf32, #tpu.memory_space<vmem>>, vector<1x9x72xf32>,
    %c0_18 = arith.constant 0 : index
    %c0_19 = arith.constant 0 : index
    %c0_20 = arith.constant 0 : index
    %32 = vector.load %arg9[%c0_18, %c0_19, %c0_20] : memref<9x9x72xf32, #tpu.memory_space<vmem>>, vector<9x1x72xf32>
    tpu.vector_store %arg9[%c0_18, %c0_19, %c0_20], %30 {strides = array<i32>} : memref<9x9x72xf32, #tpu.memory_space<vmem>>, vector<9x1x72xf32>,
    %33 = vector.extract_strided_slice %28 {offsets = [0, 0, 0, 0, 0], sizes = [1, 8, 1, 8, 72], strides = [1, 1, 1, 1, 1]} : vector<2x8x2x8x72xf32> to vector<1x8x1x8x72xf32>
    %34 = vector.shape_cast %33 : vector<1x8x1x8x72xf32> to vector<8x8x72xf32>
    %c1 = arith.constant 1 : index
    %c1_21 = arith.constant 1 : index
    %c0_22 = arith.constant 0 : index
    %35 = vector.load %arg9[%c1, %c1_21, %c0_22] : memref<9x9x72xf32, #tpu.memory_space<vmem>>, vector<8x8x72xf32>
    tpu.vector_store %arg9[%c1, %c1_21, %c0_22], %34 {strides = array<i32>} : memref<9x9x72xf32, #tpu.memory_space<vmem>>, vector<8x8x72xf32>,
    %c0_23 = arith.constant 0 : index
    %c0_24 = arith.constant 0 : index
    %c0_25 = arith.constant 0 : index
    %36 = vector.load %arg10[%c0_23, %c0_24, %c0_25] : memref<9x9x72xf32, #tpu.memory_space<vmem>>, vector<1x9x72xf32>
    tpu.vector_store %arg10[%c0_23, %c0_24, %c0_25], %29 {strides = array<i32>} : memref<9x9x72xf32, #tpu.memory_space<vmem>>, vector<1x9x72xf32>,
    %c0_26 = arith.constant 0 : index
    %c0_27 = arith.constant 0 : index
    %c0_28 = arith.constant 0 : index
    %37 = vector.load %arg10[%c0_26, %c0_27, %c0_28] : memref<9x9x72xf32, #tpu.memory_space<vmem>>, vector<9x1x72xf32>
    tpu.vector_store %arg10[%c0_26, %c0_27, %c0_28], %30 {strides = array<i32>} : memref<9x9x72xf32, #tpu.memory_space<vmem>>, vector<9x1x72xf32>,
    %38 = vector.extract_strided_slice %28 {offsets = [1, 0, 0, 0, 0], sizes = [1, 8, 1, 8, 72], strides = [1, 1, 1, 1, 1]} : vector<2x8x2x8x72xf32> to vector<1x8x1x8x72xf32>
    %39 = vector.shape_cast %38 : vector<1x8x1x8x72xf32> to vector<8x8x72xf32>
    %c1_29 = arith.constant 1 : index
    %c1_30 = arith.constant 1 : index
    %c0_31 = arith.constant 0 : index
    %40 = vector.load %arg10[%c1_29, %c1_30, %c0_31] : memref<9x9x72xf32, #tpu.memory_space<vmem>>, vector<8x8x72xf32>
    tpu.vector_store %arg10[%c1_29, %c1_30, %c0_31], %39 {strides = array<i32>} : memref<9x9x72xf32, #tpu.memory_space<vmem>>, vector<8x8x72xf32>,
    %c0_32 = arith.constant 0 : index
    %c0_33 = arith.constant 0 : index
    %c0_34 = arith.constant 0 : index
    %41 = vector.load %arg11[%c0_32, %c0_33, %c0_34] : memref<9x9x72xf32, #tpu.memory_space<vmem>>, vector<1x9x72xf32>
    tpu.vector_store %arg11[%c0_32, %c0_33, %c0_34], %29 {strides = array<i32>} : memref<9x9x72xf32, #tpu.memory_space<vmem>>, vector<1x9x72xf32>,
    %c0_35 = arith.constant 0 : index
    %c0_36 = arith.constant 0 : index
    %c0_37 = arith.constant 0 : index
    %42 = vector.load %arg11[%c0_35, %c0_36, %c0_37] : memref<9x9x72xf32, #tpu.memory_space<vmem>>, vector<9x1x72xf32>
    tpu.vector_store %arg11[%c0_35, %c0_36, %c0_37], %30 {strides = array<i32>} : memref<9x9x72xf32, #tpu.memory_space<vmem>>, vector<9x1x72xf32>,
    %43 = vector.extract_strided_slice %28 {offsets = [0, 0, 1, 0, 0], sizes = [1, 8, 1, 8, 72], strides = [1, 1, 1, 1, 1]} : vector<2x8x2x8x72xf32> to vector<1x8x1x8x72xf32>
    %44 = vector.shape_cast %43 : vector<1x8x1x8x72xf32> to vector<8x8x72xf32>
    %c1_38 = arith.constant 1 : index
    %c1_39 = arith.constant 1 : index
    %c0_40 = arith.constant 0 : index
    %45 = vector.load %arg11[%c1_38, %c1_39, %c0_40] : memref<9x9x72xf32, #tpu.memory_space<vmem>>, vector<8x8x72xf32>
    tpu.vector_store %arg11[%c1_38, %c1_39, %c0_40], %44 {strides = array<i32>} : memref<9x9x72xf32, #tpu.memory_space<vmem>>, vector<8x8x72xf32>,
    %c0_41 = arith.constant 0 : index
    %c0_42 = arith.constant 0 : index
    %c0_43 = arith.constant 0 : index
    %46 = vector.load %arg12[%c0_41, %c0_42, %c0_43] : memref<9x9x72xf32, #tpu.memory_space<vmem>>, vector<1x9x72xf32>
    tpu.vector_store %arg12[%c0_41, %c0_42, %c0_43], %29 {strides = array<i32>} : memref<9x9x72xf32, #tpu.memory_space<vmem>>, vector<1x9x72xf32>,
    %c0_44 = arith.constant 0 : index
    %c0_45 = arith.constant 0 : index
    %c0_46 = arith.constant 0 : index
    %47 = vector.load %arg12[%c0_44, %c0_45, %c0_46] : memref<9x9x72xf32, #tpu.memory_space<vmem>>, vector<9x1x72xf32>
    tpu.vector_store %arg12[%c0_44, %c0_45, %c0_46], %30 {strides = array<i32>} : memref<9x9x72xf32, #tpu.memory_space<vmem>>, vector<9x1x72xf32>,
    %48 = vector.extract_strided_slice %28 {offsets = [1, 0, 1, 0, 0], sizes = [1, 8, 1, 8, 72], strides = [1, 1, 1, 1, 1]} : vector<2x8x2x8x72xf32> to vector<1x8x1x8x72xf32>
    %49 = vector.shape_cast %48 : vector<1x8x1x8x72xf32> to vector<8x8x72xf32>
    %c1_47 = arith.constant 1 : index
    %c1_48 = arith.constant 1 : index
    %c0_49 = arith.constant 0 : index
    %50 = vector.load %arg12[%c1_47, %c1_48, %c0_49] : memref<9x9x72xf32, #tpu.memory_space<vmem>>, vector<8x8x72xf32>
    tpu.vector_store %arg12[%c1_47, %c1_48, %c0_49], %49 {strides = array<i32>} : memref<9x9x72xf32, #tpu.memory_space<vmem>>, vector<8x8x72xf32>,
    %c0_50 = arith.constant 0 : index
    %c0_51 = arith.constant 0 : index
    %51 = vector.load %arg5[%c0_50, %c0_51] : memref<9x72xf32, #tpu.memory_space<vmem>>, vector<9x72xf32>
    %cst_52 = arith.constant 0.000000e+00 : f32
    %52 = vector.broadcast %cst_52 : f32 to vector<8x8x72xf32>
    %c0_53 = arith.constant 0 : index
    %c0_54 = arith.constant 0 : index
    %c0_55 = arith.constant 0 : index
    %53 = vector.load %arg12[%c0_53, %c0_54, %c0_55] : memref<9x9x72xf32, #tpu.memory_space<vmem>>, vector<8x8x72xf32>
    %54 = vector.extract_strided_slice %51 {offsets = [0, 0], sizes = [1, 72], strides = [1, 1]} : vector<9x72xf32> to vector<1x72xf32>
    %55 = vector.shape_cast %54 : vector<1x72xf32> to vector<1x1x72xf32>
    %56 = vector.broadcast %55 : vector<1x1x72xf32> to vector<8x8x72xf32>
    %57 = arith.mulf %53, %56 : vector<8x8x72xf32>
    %58 = arith.addf %52, %57 : vector<8x8x72xf32>
    %c0_56 = arith.constant 0 : index
    %c1_57 = arith.constant 1 : index
    %c0_58 = arith.constant 0 : index
    %59 = vector.load %arg11[%c0_56, %c1_57, %c0_58] : memref<9x9x72xf32, #tpu.memory_space<vmem>>, vector<8x8x72xf32>
    %60 = vector.extract_strided_slice %51 {offsets = [1, 0], sizes = [1, 72], strides = [1, 1]} : vector<9x72xf32> to vector<1x72xf32>
    %61 = vector.shape_cast %60 : vector<1x72xf32> to vector<1x1x72xf32>
    %62 = vector.broadcast %61 : vector<1x1x72xf32> to vector<8x8x72xf32>
    %63 = arith.mulf %59, %62 : vector<8x8x72xf32>
    %64 = arith.addf %58, %63 : vector<8x8x72xf32>
    %c0_59 = arith.constant 0 : index
    %c1_60 = arith.constant 1 : index
    %c0_61 = arith.constant 0 : index
    %65 = vector.load %arg12[%c0_59, %c1_60, %c0_61] : memref<9x9x72xf32, #tpu.memory_space<vmem>>, vector<8x8x72xf32>
    %66 = vector.extract_strided_slice %51 {offsets = [2, 0], sizes = [1, 72], strides = [1, 1]} : vector<9x72xf32> to vector<1x72xf32>
    %67 = vector.shape_cast %66 : vector<1x72xf32> to vector<1x1x72xf32>
    %68 = vector.broadcast %67 : vector<1x1x72xf32> to vector<8x8x72xf32>
    %69 = arith.mulf %65, %68 : vector<8x8x72xf32>
    %70 = arith.addf %64, %69 : vector<8x8x72xf32>
    %c1_62 = arith.constant 1 : index
    %c0_63 = arith.constant 0 : index
    %c0_64 = arith.constant 0 : index
    %71 = vector.load %arg10[%c1_62, %c0_63, %c0_64] : memref<9x9x72xf32, #tpu.memory_space<vmem>>, vector<8x8x72xf32>
    %72 = vector.extract_strided_slice %51 {offsets = [3, 0], sizes = [1, 72], strides = [1, 1]} : vector<9x72xf32> to vector<1x72xf32>
    %73 = vector.shape_cast %72 : vector<1x72xf32> to vector<1x1x72xf32>
    %74 = vector.broadcast %73 : vector<1x1x72xf32> to vector<8x8x72xf32>
    %75 = arith.mulf %71, %74 : vector<8x8x72xf32>
    %76 = arith.addf %70, %75 : vector<8x8x72xf32>
    %c1_65 = arith.constant 1 : index
    %c1_66 = arith.constant 1 : index
    %c0_67 = arith.constant 0 : index
    %77 = vector.load %arg9[%c1_65, %c1_66, %c0_67] : memref<9x9x72xf32, #tpu.memory_space<vmem>>, vector<8x8x72xf32>
    %78 = vector.extract_strided_slice %51 {offsets = [4, 0], sizes = [1, 72], strides = [1, 1]} : vector<9x72xf32> to vector<1x72xf32>
    %79 = vector.shape_cast %78 : vector<1x72xf32> to vector<1x1x72xf32>
    %80 = vector.broadcast %79 : vector<1x1x72xf32> to vector<8x8x72xf32>
    %81 = arith.mulf %77, %80 : vector<8x8x72xf32>
    %82 = arith.addf %76, %81 : vector<8x8x72xf32>
    %c1_68 = arith.constant 1 : index
    %c1_69 = arith.constant 1 : index
    %c0_70 = arith.constant 0 : index
    %83 = vector.load %arg10[%c1_68, %c1_69, %c0_70] : memref<9x9x72xf32, #tpu.memory_space<vmem>>, vector<8x8x72xf32>
    %84 = vector.extract_strided_slice %51 {offsets = [5, 0], sizes = [1, 72], strides = [1, 1]} : vector<9x72xf32> to vector<1x72xf32>
    %85 = vector.shape_cast %84 : vector<1x72xf32> to vector<1x1x72xf32>
    %86 = vector.broadcast %85 : vector<1x1x72xf32> to vector<8x8x72xf32>
    %87 = arith.mulf %83, %86 : vector<8x8x72xf32>
    %88 = arith.addf %82, %87 : vector<8x8x72xf32>
    %c1_71 = arith.constant 1 : index
    %c0_72 = arith.constant 0 : index
    %c0_73 = arith.constant 0 : index
    %89 = vector.load %arg12[%c1_71, %c0_72, %c0_73] : memref<9x9x72xf32, #tpu.memory_space<vmem>>, vector<8x8x72xf32>
    %90 = vector.extract_strided_slice %51 {offsets = [6, 0], sizes = [1, 72], strides = [1, 1]} : vector<9x72xf32> to vector<1x72xf32>
    %91 = vector.shape_cast %90 : vector<1x72xf32> to vector<1x1x72xf32>
    %92 = vector.broadcast %91 : vector<1x1x72xf32> to vector<8x8x72xf32>
    %93 = arith.mulf %89, %92 : vector<8x8x72xf32>
    %94 = arith.addf %88, %93 : vector<8x8x72xf32>
    %c1_74 = arith.constant 1 : index
    %c1_75 = arith.constant 1 : index
    %c0_76 = arith.constant 0 : index
    %95 = vector.load %arg11[%c1_74, %c1_75, %c0_76] : memref<9x9x72xf32, #tpu.memory_space<vmem>>, vector<8x8x72xf32>
    %96 = vector.extract_strided_slice %51 {offsets = [7, 0], sizes = [1, 72], strides = [1, 1]} : vector<9x72xf32> to vector<1x72xf32>
    %97 = vector.shape_cast %96 : vector<1x72xf32> to vector<1x1x72xf32>
    %98 = vector.broadcast %97 : vector<1x1x72xf32> to vector<8x8x72xf32>
    %99 = arith.mulf %95, %98 : vector<8x8x72xf32>
    %100 = arith.addf %94, %99 : vector<8x8x72xf32>
    %c1_77 = arith.constant 1 : index
    %c1_78 = arith.constant 1 : index
    %c0_79 = arith.constant 0 : index
    %101 = vector.load %arg12[%c1_77, %c1_78, %c0_79] : memref<9x9x72xf32, #tpu.memory_space<vmem>>, vector<8x8x72xf32>
    %102 = vector.extract_strided_slice %51 {offsets = [8, 0], sizes = [1, 72], strides = [1, 1]} : vector<9x72xf32> to vector<1x72xf32>
    %103 = vector.shape_cast %102 : vector<1x72xf32> to vector<1x1x72xf32>
    %104 = vector.broadcast %103 : vector<1x1x72xf32> to vector<8x8x72xf32>
    %105 = arith.mulf %101, %104 : vector<8x8x72xf32>
    %106 = arith.addf %100, %105 : vector<8x8x72xf32>
    %cst_80 = arith.constant dense<0.000000e+00> : vector<8x72xf32>
    %107 = vector.multi_reduction <add>, %106, %cst_80 [0] : vector<8x8x72xf32> to vector<8x72xf32>
    %108 = vector.shape_cast %107 : vector<8x72xf32> to vector<1x8x72xf32>
    %cst_81 = arith.constant dense<0.000000e+00> : vector<1x72xf32>
    %109 = vector.multi_reduction <add>, %108, %cst_81 [1] : vector<1x8x72xf32> to vector<1x72xf32>
    %110 = vector.shape_cast %109 : vector<1x72xf32> to vector<1x1x72xf32>
    %111 = arith.mulf %106, %106 : vector<8x8x72xf32>
    %cst_82 = arith.constant dense<0.000000e+00> : vector<8x72xf32>
    %112 = vector.multi_reduction <add>, %111, %cst_82 [0] : vector<8x8x72xf32> to vector<8x72xf32>
    %113 = vector.shape_cast %112 : vector<8x72xf32> to vector<1x8x72xf32>
    %cst_83 = arith.constant dense<0.000000e+00> : vector<1x72xf32>
    %114 = vector.multi_reduction <add>, %113, %cst_83 [1] : vector<1x8x72xf32> to vector<1x72xf32>
    %115 = vector.shape_cast %114 : vector<1x72xf32> to vector<1x1x72xf32>
    %cst_84 = arith.constant 6.400000e+01 : f32
    %116 = vector.broadcast %cst_84 : f32 to vector<1x1x72xf32>
    %117 = arith.divf %110, %116 : vector<1x1x72xf32>
    %cst_85 = arith.constant 6.400000e+01 : f32
    %118 = vector.broadcast %cst_85 : f32 to vector<1x1x72xf32>
    %119 = arith.divf %115, %118 : vector<1x1x72xf32>
    %120 = arith.mulf %117, %117 : vector<1x1x72xf32>
    %121 = arith.subf %119, %120 : vector<1x1x72xf32>
    %c0_86 = arith.constant 0 : index
    %c0_87 = arith.constant 0 : index
    %122 = vector.load %arg6[%c0_86, %c0_87] : memref<1x72xf32, #tpu.memory_space<vmem>>, vector<1x72xf32>
    %123 = vector.shape_cast %122 : vector<1x72xf32> to vector<1x1x72xf32>
    %cst_88 = arith.constant 1.000000e-03 : f32
    %124 = vector.broadcast %cst_88 : f32 to vector<1x1x72xf32>
    %125 = arith.addf %121, %124 : vector<1x1x72xf32>
    %126 = math.rsqrt %125 : vector<1x1x72xf32>
    %127 = arith.mulf %123, %126 : vector<1x1x72xf32>
    %c0_89 = arith.constant 0 : index
    %c0_90 = arith.constant 0 : index
    %128 = vector.load %arg7[%c0_89, %c0_90] : memref<1x72xf32, #tpu.memory_space<vmem>>, vector<1x72xf32>
    %129 = vector.shape_cast %128 : vector<1x72xf32> to vector<1x1x72xf32>
    %130 = arith.mulf %117, %127 : vector<1x1x72xf32>
    %131 = arith.subf %129, %130 : vector<1x1x72xf32>
    %132 = vector.broadcast %127 : vector<1x1x72xf32> to vector<8x8x72xf32>
    %133 = arith.mulf %106, %132 : vector<8x8x72xf32>
    %134 = vector.broadcast %131 : vector<1x1x72xf32> to vector<8x8x72xf32>
    %135 = arith.addf %133, %134 : vector<8x8x72xf32>
    %c0_91 = arith.constant 0 : index
    %c0_92 = arith.constant 0 : index
    %c0_93 = arith.constant 0 : index
    %136 = vector.load %arg8[%c0_91, %c0_92, %c0_93] : memref<8x8x72xf32, #tpu.memory_space<vmem>>, vector<8x8x72xf32>
    tpu.vector_store %arg8[%c0_91, %c0_92, %c0_93], %135 {strides = array<i32>} : memref<8x8x72xf32, #tpu.memory_space<vmem>>, vector<8x8x72xf32>,
    return
  }
  func.func @transform_0(%arg0: i32) -> (i32, i32) {
    %c0_i32 = arith.constant 0 : i32
    %c0_i32_0 = arith.constant 0 : i32
    %c0_i32_1 = arith.constant 0 : i32
    return %c0_i32, %c0_i32_0 : i32, i32
  }
  func.func @transform_1(%arg0: i32) -> (i32, i32) {
    %c0_i32 = arith.constant 0 : i32
    %c0_i32_0 = arith.constant 0 : i32
    %c0_i32_1 = arith.constant 0 : i32
    return %c0_i32, %c0_i32_0 : i32, i32
  }
  func.func @transform_2(%arg0: i32) -> (i32, i32) {
    %c0_i32 = arith.constant 0 : i32
    %c0_i32_0 = arith.constant 0 : i32
    %c0_i32_1 = arith.constant 0 : i32
    return %c0_i32, %c0_i32_0 : i32, i32
  }
  func.func @transform_3(%arg0: i32) -> (i32, i32) {
    %c0_i32 = arith.constant 0 : i32
    %c0_i32_0 = arith.constant 0 : i32
    %c0_i32_1 = arith.constant 0 : i32
    return %c0_i32, %c0_i32_0 : i32, i32
  }
  func.func @transform_4(%arg0: i32) -> (i32, i32) {
    %c0_i32 = arith.constant 0 : i32
    %c0_i32_0 = arith.constant 0 : i32
    %c0_i32_1 = arith.constant 0 : i32
    return %c0_i32, %c0_i32_0 : i32, i32
  }
  func.func @transform_5(%arg0: i32) -> (i32, i32) {
    %c0_i32 = arith.constant 0 : i32
    %c0_i32_0 = arith.constant 0 : i32
    %c0_i32_1 = arith.constant 0 : i32
    return %c0_i32, %c0_i32_0 : i32, i32
  }
  func.func @transform_6(%arg0: i32) -> (i32, i32) {
    %c0_i32 = arith.constant 0 : i32
    %c0_i32_0 = arith.constant 0 : i32
    %c0_i32_1 = arith.constant 0 : i32
    return %c0_i32, %c0_i32_0 : i32, i32
  }
  func.func @transform_7(%arg0: i32) -> (i32, i32, i32) {
    %c0_i32 = arith.constant 0 : i32
    %c0_i32_0 = arith.constant 0 : i32
    %c0_i32_1 = arith.constant 0 : i32
    %c0_i32_2 = arith.constant 0 : i32
    return %c0_i32, %c0_i32_0, %c0_i32_1 : i32, i32, i32
  }
}

</mosaic_0001>

<bundles_post_ra>
// kernel: tpu_custom_call.1
= control target key start
LH: loop header
LB: loop body
LE: loop exit
PB: predicated region body
PF: predicated region fallthrough
CT: control target
= control target key end

     0   :  { %vm61_vm0 = vcmask 130048   ;;  %s2108_s0 = inlined_call_operand.vmem [shape: f32[256,16], index: 0, kind: input, shape index: {}]   ;;  %s2109_s1 = inlined_call_operand.vmem [shape: f32[16,72], index: 1, kind: input, shape index: {}]   ;;  %s2110_s2 = inlined_call_operand.vmem [shape: f32[1,72], index: 2, kind: input, shape index: {}]   ;;  %s2111_s3 = inlined_call_operand.vmem [shape: f32[1,72], index: 3, kind: input, shape index: {}]   ;;  %s2112_s4 = inlined_call_operand.vmem [shape: f32[9,72], index: 4, kind: input, shape index: {}]   ;;  %s2113_s5 = inlined_call_operand.vmem [shape: f32[1,72], index: 5, kind: input, shape index: {}]   ;;  %s2114_s6 = inlined_call_operand.vmem [shape: f32[1,72], index: 6, kind: input, shape index: {}]   ;;  %s2115_s7 = inlined_call_operand.hbm [shape: f32[8,8,72], index: 7, kind: output, shape index: {}]  }
   0x1   :  { %v60_v0 = vld [vmem:[%s2109_s1 + $0x8] sm:$0xff]  ;;  %v59_v1 = vld [vmem:[%s2109_s1] sm:$0xff]  ;;  %v29_v4 = vld [vmem:[%s2108_s0 + $0x10] sm:$0xff] }
   0x2   :  { %v27_v2 = vld [vmem:[%s2108_s0] sm:$0xff]  ;;  %1192 = vmatprep.subr.mxu0 %v60_v0  ;;  %v28_v3 = vld [vmem:[%s2108_s0 + $0x8] sm:$0xff]  ;;  %1244 = vmatprep.subr.mxu1 %v60_v0  ;;  %v30_v5 = vld [vmem:[%s2108_s0 + $0x18] sm:$0xff] }
   0x3   :  { %1196 = vmatprep.mubr.msk.f32.mxu0 %vm61_vm0, %v27_v2  ;;  %1193 = vmatpush3.msra.mxu0 %v60_v0  ;;  %v43_v6 = vld [vmem:[%s2108_s0 + $0x80] sm:$0xff]  ;;  %v44_v7 = vld [vmem:[%s2108_s0 + $0x88] sm:$0xff]  ;;  %v45_v8 = vld [vmem:[%s2108_s0 + $0x90] sm:$0xff] }
   0x4   :  { %1194 = vmatprep.subr.mxu0 %v59_v1  ;;  %1246 = vmatpush3.msra.mxu1 %v60_v0  ;;  %v31_v9 = vld [vmem:[%s2108_s0 + $0x20] sm:$0xff]  ;;  %v46_v10 = vld [vmem:[%s2108_s0 + $0x98] sm:$0xff]  ;;  %v32_v11 = vld [vmem:[%s2108_s0 + $0x28] sm:$0xff] }
   0x5   :  { %1195 = vmatpush3.msra.mxu0 %v59_v1  ;;  %1245 = vmatprep.subr.mxu1 %v59_v1  ;;  %v47_v12 = vld [vmem:[%s2108_s0 + $0xa0] sm:$0xff]  ;;  %v33_v13 = vld [vmem:[%s2108_s0 + $0x30] sm:$0xff] }
   0x6   :  { %1197 = vmatmul.mubr.msk.f32.vlgmr.msra.gmra.mxu0 %vm61_vm0, %v28_v3  ;;  %1247 = vmatpush3.msra.mxu1 %v59_v1 }
   0x7   :  { %1199 = vmatprep.mubr.msk.f32.mxu0 %vm61_vm0, %v29_v4  ;;  %1220 = vmatprep.mubr.msk.f32.mxu1 %vm61_vm0, %v43_v6 }
   0x8   :  { %1221 = vmatmul.mubr.msk.f32.vlgmr.msra.gmra.mxu1 %vm61_vm0, %v44_v7 }
   0x9   :  { %1223 = vmatprep.mubr.msk.f32.mxu1 %vm61_vm0, %v45_v8 }
   0xa   :  { %1200 = vmatmul.mubr.msk.f32.gmra.mxu0 %vm61_vm0, %v30_v5 }
   0xb   :  { %1202 = vmatprep.mubr.msk.f32.mxu0 %vm61_vm0, %v31_v9 }
   0xc   :  { %12 = vsyncpa [#allocation7], 0  ;;  %1224 = vmatmul.mubr.msk.f32.gmra.mxu1 %vm61_vm0, %v46_v10  ;;  %v48_v14 = vld [vmem:[%s2108_s0 + $0xa8] sm:$0xff]  ;;  %v34_v15 = vld [vmem:[%s2108_s0 + $0x38] sm:$0xff]  ;;  %vm383_vm1 = vcmask 588800   ;;  %vm675_vm2 = vcmask 581632  }
   0xd   :  { %1226 = vmatprep.mubr.msk.f32.mxu1 %vm61_vm0, %v47_v12  ;;  %v49_v16 = vld [vmem:[%s2108_s0 + $0xb0] sm:$0xff]  ;;  %v35_v17 = vld [vmem:[%s2108_s0 + $0x40] sm:$0xff]  ;;  %v50_v18 = vld [vmem:[%s2108_s0 + $0xb8] sm:$0xff]  ;;  %v1278_v34 = vmov 0.0  }
   0xe   :  { %1203 = vmatmul.mubr.msk.f32.gmra.mxu0 %vm61_vm0, %v32_v11  ;;  %v36_v19 = vld [vmem:[%s2108_s0 + $0x48] sm:$0xff]  ;;  %v51_v20 = vld [vmem:[%s2108_s0 + $0xc0] sm:$0xff]  ;;  %v37_v21 = vld [vmem:[%s2108_s0 + $0x50] sm:$0xff]  ;;  %738 = vst.msk [vmem:[#allocation5 + $0x10] sm:$0x1] %vm675_vm2, %v1278_v34 }
   0xf   :  { %1205 = vmatprep.mubr.msk.f32.mxu0 %vm61_vm0, %v33_v13  ;;  %v52_v22 = vld [vmem:[%s2108_s0 + $0xc8] sm:$0xff]  ;;  %v38_v23 = vld [vmem:[%s2108_s0 + $0x58] sm:$0xff]  ;;  %v53_v24 = vld [vmem:[%s2108_s0 + $0xd0] sm:$0xff]  ;;  %698 = vst.msk [vmem:[#allocation3 + $0x10] sm:$0x1] %vm675_vm2, %v1278_v34 }
  0x10   :  { %1227 = vmatmul.mubr.msk.f32.gmra.mxu1 %vm61_vm0, %v48_v14  ;;  %v39_v25 = vld [vmem:[%s2108_s0 + $0x60] sm:$0xff]  ;;  %v54_v26 = vld [vmem:[%s2108_s0 + $0xd8] sm:$0xff]  ;;  %v40_v27 = vld [vmem:[%s2108_s0 + $0x68] sm:$0xff]  ;;  %699 = vst.msk [vmem:[#allocation3 + $0x20] sm:$0x1] %vm675_vm2, %v1278_v34 }
  0x11   :  { %1229 = vmatprep.mubr.msk.f32.mxu1 %vm61_vm0, %v49_v16  ;;  %v55_v28 = vld [vmem:[%s2108_s0 + $0xe0] sm:$0xff]  ;;  %v41_v29 = vld [vmem:[%s2108_s0 + $0x70] sm:$0xff]  ;;  %v56_v30 = vld [vmem:[%s2108_s0 + $0xe8] sm:$0xff]  ;;  %700 = vst.msk [vmem:[#allocation3 + $0x30] sm:$0x1] %vm675_vm2, %v1278_v34 }
  0x12   :  { %1206 = vmatmul.mubr.msk.f32.gmra.mxu0 %vm61_vm0, %v34_v15  ;;  %v42_v31 = vld [vmem:[%s2108_s0 + $0x78] sm:$0xff]  ;;  %v57_v32 = vld [vmem:[%s2108_s0 + $0xf0] sm:$0xff]  ;;  %701 = vst.msk [vmem:[#allocation3 + $0x40] sm:$0x1] %vm675_vm2, %v1278_v34  ;;  %702 = vst.msk [vmem:[#allocation3 + $0x50] sm:$0x1] %vm675_vm2, %v1278_v34 }
  0x13   :  { %1208 = vmatprep.mubr.msk.f32.mxu0 %vm61_vm0, %v35_v17  ;;  %v58_v33 = vld [vmem:[%s2108_s0 + $0xf8] sm:$0xff]  ;;  %703 = vst.msk [vmem:[#allocation3 + $0x60] sm:$0x1] %vm675_vm2, %v1278_v34  ;;  %704 = vst.msk [vmem:[#allocation3 + $0x70] sm:$0x1] %vm675_vm2, %v1278_v34 }
  0x14   :  { %1230 = vmatmul.mubr.msk.f32.gmra.mxu1 %vm61_vm0, %v50_v18  ;;  %705 = vst.msk [vmem:[#allocation3 + $0x80] sm:$0x1] %vm675_vm2, %v1278_v34  ;;  %716 = vst.msk [vmem:[#allocation4 + $0x8] sm:$0x1] %vm675_vm2, %v1278_v34 }
  0x15   :  { %1232 = vmatprep.mubr.msk.f32.mxu1 %vm61_vm0, %v51_v20  ;;  %715 = vst.msk [vmem:[#allocation4] sm:$0xff] %vm383_vm1, %v1278_v34  ;;  %735 = vst.msk [vmem:[#allocation5] sm:$0xff] %vm383_vm1, %v1278_v34 }
  0x16   :  { %1209 = vmatmul.mubr.msk.f32.gmra.mxu0 %vm61_vm0, %v36_v19  ;;  %736 = vst.msk [vmem:[#allocation5 + $0x8] sm:$0x1] %vm675_vm2, %v1278_v34  ;;  %739 = vst.msk [vmem:[#allocation5 + $0x20] sm:$0x1] %vm675_vm2, %v1278_v34 }
  0x17   :  { %1211 = vmatprep.mubr.msk.f32.mxu0 %vm61_vm0, %v37_v21  ;;  %740 = vst.msk [vmem:[#allocation5 + $0x30] sm:$0x1] %vm675_vm2, %v1278_v34  ;;  %741 = vst.msk [vmem:[#allocation5 + $0x40] sm:$0x1] %vm675_vm2, %v1278_v34 }
  0x18   :  { %1233 = vmatmul.mubr.msk.f32.gmra.mxu1 %vm61_vm0, %v52_v22  ;;  %742 = vst.msk [vmem:[#allocation5 + $0x50] sm:$0x1] %vm675_vm2, %v1278_v34  ;;  %743 = vst.msk [vmem:[#allocation5 + $0x60] sm:$0x1] %vm675_vm2, %v1278_v34 }
  0x19   :  { %1235 = vmatprep.mubr.msk.f32.mxu1 %vm61_vm0, %v53_v24  ;;  %744 = vst.msk [vmem:[#allocation5 + $0x70] sm:$0x1] %vm675_vm2, %v1278_v34  ;;  %745 = vst.msk [vmem:[#allocation5 + $0x80] sm:$0x1] %vm675_vm2, %v1278_v34 }
  0x1a   :  { %1212 = vmatmul.mubr.msk.f32.gmra.mxu0 %vm61_vm0, %v38_v23  ;;  %737 = vst.msk [vmem:[#allocation5] sm:$0x1] %vm675_vm2, %v1278_v34 }
  0x1b   :  { %1214 = vmatprep.mubr.msk.f32.mxu0 %vm61_vm0, %v39_v25 }
  0x1c   :  { %1236 = vmatmul.mubr.msk.f32.gmra.mxu1 %vm61_vm0, %v54_v26 }
  0x1d   :  { %1238 = vmatprep.mubr.msk.f32.mxu1 %vm61_vm0, %v55_v28 }
  0x1e   :  { %1215 = vmatmul.mubr.msk.f32.gmra.mxu0 %vm61_vm0, %v40_v27 }
  0x1f   :  { %1217 = vmatprep.mubr.msk.f32.mxu0 %vm61_vm0, %v41_v29 }
  0x20   :  { %1239 = vmatmul.mubr.msk.f32.gmra.mxu1 %vm61_vm0, %v56_v30 }
  0x21   :  { %1241 = vmatprep.mubr.msk.f32.mxu1 %vm61_vm0, %v57_v32 }
  0x22   :  { %1218 = vmatmul.mubr.msk.f32.gmra.mxu0 %vm61_vm0, %v42_v31 }
  0x24   :  { %1242 = vmatmul.mubr.msk.f32.gmra.mxu1 %vm61_vm0, %v58_v33 }
  0xc6   :  { %v1477_v35 = vpop.f32.mrf.mxu0 }
  0xc7   :  { %v454_v37 = vmul.f32 %v1477_v35, %v1477_v35  ;;  %v385_v42 = vsel %vm383_vm1, %v1477_v35, 0.0 }
  0xc8   :  { %v1479_v36 = vpop.f32.mrf.mxu0  ;;  %v1487_v40 = vpop.f32.mrf.mxu1 }
  0xc9   :  { %v384_v38 = vsel %vm383_vm1, %v1479_v36, 0.0  ;;  %v453_v39 = vmul.f32 %v1479_v36, %v1479_v36  ;;  %v486_v47 = vsel %vm383_vm1, %v454_v37, 0.0 }
  0xca   :  { %v1489_v41 = vpop.f32.mrf.mxu0  ;;  %v1494_v44 = vpop.f32.mrf.mxu1  ;;  %v386_v45 = vadd.f32 %v385_v42, %v384_v38 }
  0xcb   :  { %v485_v43 = vsel %vm383_vm1, %v453_v39, 0.0  ;;  %v456_v48 = vmul.f32 %v1489_v41, %v1489_v41  ;;  %v389_v55 = vsel %vm383_vm1, %v1489_v41, 0.0 }
  0xcc   :  { %v1496_v46 = vpop.f32.mrf.mxu0  ;;  %v1505_v51 = vpop.f32.mrf.mxu1  ;;  %v487_v52 = vadd.f32 %v486_v47, %v485_v43 }
  0xcd   :  { %v387_v49 = vsel %vm383_vm1, %v1496_v46, 0.0  ;;  %v455_v50 = vmul.f32 %v1496_v46, %v1496_v46  ;;  %v490_v61 = vsel %vm383_vm1, %v456_v48, 0.0 }
  0xce   :  { %v388_v53 = vadd.f32 %v387_v49, %v386_v45  ;;  %v1507_v54 = vpop.f32.mrf.mxu0  ;;  %v1514_v60 = vpop.f32.mrf.mxu1 }
  0xcf   :  { %v488_v56 = vsel %vm383_vm1, %v455_v50, 0.0  ;;  %v458_v62 = vmul.f32 %v1507_v54, %v1507_v54  ;;  %v393_v4 = vsel %vm383_vm1, %v1507_v54, 0.0 }
  0xd0   :  { %v489_v57 = vadd.f32 %v488_v56, %v487_v52  ;;  %v1512_v58 = vpop.f32.mrf.mxu0  ;;  %v390_v59 = vadd.f32 %v389_v55, %v388_v53  ;;  %v1530_v9 = vpop.f32.mrf.mxu1 }
  0xd1   :  { %v391_v63 = vsel %vm383_vm1, %v1512_v58, 0.0  ;;  %v457_v0 = vmul.f32 %v1512_v58, %v1512_v58  ;;  %v494_v10 = vsel %vm383_vm1, %v458_v62, 0.0 }
  0xd2   :  { %v392_v1 = vadd.f32 %v391_v63, %v390_v59  ;;  %v491_v2 = vadd.f32 %v490_v61, %v489_v57  ;;  %v1523_v3 = vpop.f32.mrf.mxu0  ;;  %v1546_v22 = vpop.f32.mrf.mxu1 }
  0xd3   :  { %v492_v5 = vsel %vm383_vm1, %v457_v0, 0.0  ;;  %v460_v11 = vmul.f32 %v1523_v3, %v1523_v3  ;;  %v397_v17 = vsel %vm383_vm1, %v1523_v3, 0.0 }
  0xd4   :  { %v493_v6 = vadd.f32 %v492_v5, %v491_v2  ;;  %v1528_v7 = vpop.f32.mrf.mxu0  ;;  %v394_v8 = vadd.f32 %v393_v4, %v392_v1  ;;  %v1562_v37 = vpop.f32.mrf.mxu1 }
  0xd5   :  { %v395_v12 = vsel %vm383_vm1, %v1528_v7, 0.0  ;;  %v459_v13 = vmul.f32 %v1528_v7, %v1528_v7  ;;  %v498_v23 = vsel %vm383_vm1, %v460_v11, 0.0 }
  0xd6   :  { %v396_v14 = vadd.f32 %v395_v12, %v394_v8  ;;  %v495_v15 = vadd.f32 %v494_v10, %v493_v6  ;;  %v1539_v16 = vpop.f32.mrf.mxu0  ;;  %v1578_v56 = vpop.f32.mrf.mxu1 }
  0xd7   :  { %v496_v18 = vsel %vm383_vm1, %v459_v13, 0.0  ;;  %v462_v24 = vmul.f32 %v1539_v16, %v1539_v16  ;;  %v401_v30 = vsel %vm383_vm1, %v1539_v16, 0.0 }
  0xd8   :  { %v497_v19 = vadd.f32 %v496_v18, %v495_v15  ;;  %v1544_v20 = vpop.f32.mrf.mxu0  ;;  %v398_v21 = vadd.f32 %v397_v17, %v396_v14  ;;  %v1594_v10 = vpop.f32.mrf.mxu1 }
  0xd9   :  { %v399_v25 = vsel %vm383_vm1, %v1544_v20, 0.0  ;;  %v461_v26 = vmul.f32 %v1544_v20, %v1544_v20  ;;  %v502_v38 = vsel %vm383_vm1, %v462_v24, 0.0 }
  0xda   :  { %v400_v27 = vadd.f32 %v399_v25, %v398_v21  ;;  %v499_v28 = vadd.f32 %v498_v23, %v497_v19  ;;  %v1555_v29 = vpop.f32.mrf.mxu0  ;;  %v469_v21 = vmul.f32 %v1494_v44, %v1494_v44  ;;  %v1608_v25 = vpop.f32.mrf.mxu1 }
  0xdb   :  { %v500_v31 = vsel %vm383_vm1, %v461_v26, 0.0  ;;  %v464_v39 = vmul.f32 %v1555_v29, %v1555_v29  ;;  %v405_v49 = vsel %vm383_vm1, %v1555_v29, 0.0 }
  0xdc   :  { %v501_v32 = vadd.f32 %v500_v31, %v499_v28  ;;  %v1560_v33 = vpop.f32.mrf.mxu0  ;;  %v402_v34 = vadd.f32 %v401_v30, %v400_v27  ;;  %v470_v27 = vmul.f32 %v1487_v40, %v1487_v40  ;;  %v415_v28 = vsel %vm383_vm1, %v1494_v44, 0.0 }
  0xdd   :  { %v403_v42 = vsel %vm383_vm1, %v1560_v33, 0.0  ;;  %v463_v43 = vmul.f32 %v1560_v33, %v1560_v33  ;;  %v506_v57 = vsel %vm383_vm1, %v464_v39, 0.0 }
  0xde   :  { %v404_v45 = vadd.f32 %v403_v42, %v402_v34  ;;  %v503_v47 = vadd.f32 %v502_v38, %v501_v32  ;;  %v1571_v48 = vpop.f32.mrf.mxu0  ;;  %v417_v32 = vsel %vm383_vm1, %v1487_v40, 0.0  ;;  %v516_v34 = vsel %vm383_vm1, %v469_v21, 0.0 }
  0xdf   :  { %v504_v50 = vsel %vm383_vm1, %v463_v43, 0.0  ;;  %v466_v59 = vmul.f32 %v1571_v48, %v1571_v48  ;;  %v409_v2 = vsel %vm383_vm1, %v1571_v48, 0.0  ;;  %v471_v38 = vmul.f32 %v1514_v60, %v1514_v60  ;;  %v1620_v43 = vpop.f32.mrf.mxu1 }
  0xe0   :  { %v505_v52 = vadd.f32 %v504_v50, %v503_v47  ;;  %v1576_v53 = vpop.f32.mrf.mxu0  ;;  %v406_v55 = vadd.f32 %v405_v49, %v404_v45  ;;  %v518_v45 = vsel %vm383_vm1, %v470_v27, 0.0  ;;  %v472_v47 = vmul.f32 %v1505_v51, %v1505_v51 }
  0xe1   :  { %v407_v61 = vsel %vm383_vm1, %v1576_v53, 0.0  ;;  %v465_v62 = vmul.f32 %v1576_v53, %v1576_v53  ;;  %v510_v11 = vsel %vm383_vm1, %v466_v59, 0.0  ;;  %v419_v49 = vsel %vm383_vm1, %v1514_v60, 0.0 }
  0xe2   :  { %v408_v63 = vadd.f32 %v407_v61, %v406_v55  ;;  %v507_v0 = vadd.f32 %v506_v57, %v505_v52  ;;  %v1587_v1 = vpop.f32.mrf.mxu0  ;;  %v421_v55 = vsel %vm383_vm1, %v1505_v51, 0.0  ;;  %v520_v57 = vsel %vm383_vm1, %v471_v38, 0.0 }
  0xe3   :  { %v508_v4 = vsel %vm383_vm1, %v465_v62, 0.0  ;;  %v468_v12 = vmul.f32 %v1587_v1, %v1587_v1  ;;  %v413_v18 = vsel %vm383_vm1, %v1587_v1, 0.0  ;;  %v473_v59 = vmul.f32 %v1546_v22, %v1546_v22 }
  0xe4   :  { %v509_v5 = vadd.f32 %v508_v4, %v507_v0  ;;  %v1592_v6 = vpop.f32.mrf.mxu0  ;;  %v410_v8 = vadd.f32 %v409_v2, %v408_v63  ;;  %v1632_v63 = vpop.f32.mrf.mxu1  ;;  %v522_v0 = vsel %vm383_vm1, %v472_v47, 0.0  ;;  %v474_v2 = vmul.f32 %v1530_v9, %v1530_v9 }
  0xe5   :  { %v411_v13 = vsel %vm383_vm1, %v1592_v6, 0.0  ;;  %v467_v14 = vmul.f32 %v1592_v6, %v1592_v6  ;;  %v514_v26 = vsel %vm383_vm1, %v468_v12, 0.0  ;;  %v423_v4 = vsel %vm383_vm1, %v1546_v22, 0.0 }
  0xe6   :  { %v412_v15 = vadd.f32 %v411_v13, %v410_v8  ;;  %v511_v17 = vadd.f32 %v510_v11, %v509_v5  ;;  %v425_v11 = vsel %vm383_vm1, %v1530_v9, 0.0  ;;  %v524_v12 = vsel %vm383_vm1, %v473_v59, 0.0 }
  0xe7   :  { %v512_v19 = vsel %vm383_vm1, %v467_v14, 0.0  ;;  %v475_v13 = vmul.f32 %v1578_v56, %v1578_v56  ;;  %v427_v21 = vsel %vm383_vm1, %v1578_v56, 0.0  ;;  %v478_v38 = vmul.f32 %v1594_v10, %v1594_v10 }
  0xe8   :  { %v414_v23 = vadd.f32 %v413_v18, %v412_v15  ;;  %v513_v24 = vadd.f32 %v512_v19, %v511_v17  ;;  %v1644_v17 = vpop.f32.mrf.mxu1  ;;  %v526_v18 = vsel %vm383_vm1, %v474_v2, 0.0  ;;  %v476_v19 = vmul.f32 %v1562_v37, %v1562_v37 }
  0xe9   :  { %v528_v27 = vsel %vm383_vm1, %v475_v13, 0.0  ;;  %v433_v47 = vsel %vm383_vm1, %v1594_v10, 0.0  ;;  %v534_v59 = vsel %vm383_vm1, %v478_v38, 0.0 }
  0xea   :  { %v515_v30 = vadd.f32 %v514_v26, %v513_v24  ;;  %v416_v31 = vadd.f32 %v415_v28, %v414_v23  ;;  %v429_v26 = vsel %vm383_vm1, %v1562_v37, 0.0  ;;  %v477_v28 = vmul.f32 %v1608_v25, %v1608_v25 }
  0xec   :  { %v517_v39 = vadd.f32 %v516_v34, %v515_v30  ;;  %v418_v42 = vadd.f32 %v417_v32, %v416_v31  ;;  %v1656_v32 = vpop.f32.mrf.mxu1  ;;  %v530_v34 = vsel %vm383_vm1, %v476_v19, 0.0 }
  0xee   :  { %v420_v50 = vadd.f32 %v419_v49, %v418_v42  ;;  %v519_v52 = vadd.f32 %v518_v45, %v517_v39  ;;  %v431_v39 = vsel %vm383_vm1, %v1608_v25, 0.0  ;;  %v532_v49 = vsel %vm383_vm1, %v477_v28, 0.0 }
  0xf0   :  { %v521_v61 = vadd.f32 %v520_v57, %v519_v52  ;;  %v422_v62 = vadd.f32 %v421_v55, %v420_v50  ;;  %v479_v50 = vmul.f32 %v1632_v63, %v1632_v63  ;;  %v1668_v57 = vpop.f32.mrf.mxu1 }
  0xf2   :  { %v424_v5 = vadd.f32 %v423_v4, %v422_v62  ;;  %v523_v8 = vadd.f32 %v522_v0, %v521_v61  ;;  %v480_v61 = vmul.f32 %v1620_v43, %v1620_v43  ;;  %v435_v62 = vsel %vm383_vm1, %v1632_v63, 0.0  ;;  %v1680_v13 = vpop.f32.mrf.mxu1 }
  0xf3   :  { %v437_v4 = vsel %vm383_vm1, %v1620_v43, 0.0 }
  0xf4   :  { %v525_v14 = vadd.f32 %v524_v12, %v523_v8  ;;  %v426_v15 = vadd.f32 %v425_v11, %v424_v5  ;;  %v536_v5 = vsel %vm383_vm1, %v479_v50, 0.0  ;;  %v481_v8 = vmul.f32 %v1656_v32, %v1656_v32 }
  0xf6   :  { %v428_v23 = vadd.f32 %v427_v21, %v426_v15  ;;  %v527_v24 = vadd.f32 %v526_v18, %v525_v14  ;;  %v538_v14 = vsel %vm383_vm1, %v480_v61, 0.0  ;;  %v482_v15 = vmul.f32 %v1644_v17, %v1644_v17 }
  0xf7   :  { %v439_v18 = vsel %vm383_vm1, %v1656_v32, 0.0 }
  0xf8   :  { %v529_v30 = vadd.f32 %v528_v27, %v527_v24  ;;  %v430_v31 = vadd.f32 %v429_v26, %v428_v23  ;;  %v441_v23 = vsel %vm383_vm1, %v1644_v17, 0.0  ;;  %v540_v24 = vsel %vm383_vm1, %v481_v8, 0.0 }
  0xf9   :  { %v483_v26 = vmul.f32 %v1680_v13, %v1680_v13 }
  0xfa   :  { %v432_v42 = vadd.f32 %v431_v39, %v430_v31  ;;  %v531_v45 = vadd.f32 %v530_v34, %v529_v30  ;;  %v542_v30 = vsel %vm383_vm1, %v482_v15, 0.0  ;;  %v484_v31 = vmul.f32 %v1668_v57, %v1668_v57 }
  0xfb   :  { %v443_v34 = vsel %vm383_vm1, %v1680_v13, 0.0 }
  0xfc   :  { %v533_v52 = vadd.f32 %v532_v49, %v531_v45  ;;  %v434_v55 = vadd.f32 %v433_v47, %v432_v42  ;;  %v445_v42 = vsel %vm383_vm1, %v1668_v57, 0.0  ;;  %v544_v45 = vsel %vm383_vm1, %v483_v26, 0.0 }
  0xfd   :  { %v546_v50 = vsel %vm383_vm1, %v484_v31, 0.0  ;;  %v1711_v31 = vld [vmem:[%s2112_s4] sm:$0xff] }
  0xfe   :  { %v436_v0 = vadd.f32 %v435_v62, %v434_v55  ;;  %v535_v2 = vadd.f32 %v534_v59, %v533_v52 }
 0x100   :  { %v537_v11 = vadd.f32 %v536_v5, %v535_v2  ;;  %v438_v12 = vadd.f32 %v437_v4, %v436_v0 }
 0x102   :  { %v440_v19 = vadd.f32 %v439_v18, %v438_v12  ;;  %v539_v21 = vadd.f32 %v538_v14, %v537_v11 }
 0x104   :  { %v541_v27 = vadd.f32 %v540_v24, %v539_v21  ;;  %v442_v28 = vadd.f32 %v441_v23, %v440_v19  ;;  %v567_v24 = vlaneseq }
 0x106   :  { %v444_v38 = vadd.f32 %v443_v34, %v442_v28  ;;  %v543_v39 = vadd.f32 %v542_v30, %v541_v27  ;;  %v1701_v26 = vshrl.u32 %v567_v24, 7  ;;  %v559_v30 = vld [vmem:[%s2110_s2] sm:$0x1] }
 0x108   :  { %v446_v47 = vadd.f32 %v445_v42, %v444_v38  ;;  %v545_v49 = vadd.f32 %v544_v45, %v543_v39  ;;  %v795_v27 = vsub.s32 1, %v1701_v26  ;;  %v823_v28 = vsub.s32 2, %v1701_v26 }
 0x109   :  { %v1714_v34 = vsub.s32 0, %v1701_v26  ;;  %v879_v39 = vsub.s32 4, %v1701_v26  ;;  %v851_v42 = vsub.s32 3, %v1701_v26  ;;  %v907_v45 = vsub.s32 5, %v1701_v26 }
 0x10a   :  { %v447_v52 = vrot.slane %v446_v47, 4  ;;  %v547_v55 = vadd.f32 %v546_v50, %v545_v49  ;;  %v1720_v49 = vrot.slane %v1711_v31, %v795_v27 }
 0x10b   :  { %2121 = vst [vmem:[#allocation9_spill] sm:$0xff] %v1714_v34  ;;  %v1724_v50 = vrot.slane %v1711_v31, %v1714_v34 }
 0x10c   :  { %v448_v59 = vadd.f32 %v447_v52, %v446_v47  ;;  %v548_v61 = vrot.slane %v547_v55, 4  ;;  %v1727_v52 = vrot.slane %v1711_v31, %v823_v28 }
 0x10e   :  { %v449_v62 = vrot.slane %v448_v59, 2  ;;  %v549_v0 = vadd.f32 %v548_v61, %v547_v55  ;;  %v563_v55 = vld [vmem:[%s2111_s3] sm:$0x1]  ;;  %v785_v61 = vld [vmem:[#allocation4 + $0x1] sm:$0xff] }
 0x110   :  { %v450_v2 = vadd.f32 %v449_v62, %v448_v59  ;;  %v550_v4 = vrot.slane %v549_v0, 2  ;;  %v757_v59 = vld [vmem:[#allocation5] sm:$0xff] }
 0x111   :  { %v813_v62 = vld [vmem:[#allocation5 + $0x1] sm:$0xff] }
 0x112   :  { %v451_v5 = vrot.slane %v450_v2, 1  ;;  %v551_v8 = vadd.f32 %v550_v4, %v549_v0  ;;  %v963_v4 = vsub.s32 7, %v1701_v26 }
 0x114   :  { %v452_v11 = vadd.f32 %v451_v5, %v450_v2  ;;  %v552_v12 = vrot.slane %v551_v8, 1  ;;  %v1735_v5 = vrot.slane %v1711_v31, %v879_v39 }
 0x116   :  { %v553_v14 = vadd.f32 %v552_v12, %v551_v8  ;;  %v555_v15 = vmul.f32 0.00390625, %v452_v11  ;;  %v935_v8 = vsub.s32 6, %v1701_v26  ;;  %v1739_v11 = vrot.slane %v1711_v31, %v851_v42 }
 0x117   :  { %v1742_v12 = vrot.slane %v1711_v31, %v907_v45 }
 0x118   :  { %v556_v18 = vmul.f32 0.00390625, %v553_v14  ;;  %v557_v19 = vmul.f32 %v555_v15, %v555_v15 }
 0x11a   :  { %v558_v21 = vsub.f32 %v556_v18, %v557_v19  ;;  %v1745_v18 = vmul.f32 %v1724_v50, %v757_v59  ;;  %v1751_v19 = vmul.f32 %v1727_v52, %v813_v62 }
 0x11c   :  { %v560_v23 = vadd.f32 0.001, %v558_v21 }
 0x11e   :  { %1252 = vrsqrt.f32 %v560_v23 }
 0x12b   :  { %v1253_v38 = vpop.eup %1252 }
 0x12c   :  { %v562_v47 = vmul.f32 %v1253_v38, %v559_v30 }
 0x12e   :  { %v564_v0 = vmul.f32 %v562_v47, %v555_v15  ;;  %v570_v2 = vrot.slane %v562_v47, %v1714_v34  ;;  %v1748_v15 = vmul.f32 %v1720_v49, %v785_v61 }
 0x130   :  { %v565_v14 = vsub.f32 %v563_v55, %v564_v0  ;;  %v585_v21 = vmul.f32 %v1571_v48, %v570_v2  ;;  %v586_v23 = vmul.f32 %v570_v2, %v1592_v6  ;;  %v587_v24 = vmul.f32 %v1587_v1, %v570_v2 }
 0x131   :  { %v601_v27 = vmul.f32 %v1644_v17, %v570_v2  ;;  %v602_v30 = vmul.f32 %v570_v2, %v1680_v13  ;;  %v603_v38 = vmul.f32 %v1668_v57, %v570_v2  ;;  %v572_v39 = vmul.f32 %v570_v2, %v1479_v36 }
 0x132   :  { %v1758_v28 = vrot.slane %v565_v14, %v1714_v34  ;;  %v573_v42 = vmul.f32 %v1477_v35, %v570_v2  ;;  %v574_v13 = vmul.f32 %v570_v2, %v1496_v46  ;;  %v575_v57 = vmul.f32 %v1489_v41, %v570_v2 }
 0x133   :  { %v576_v0 = vmul.f32 %v570_v2, %v1512_v58  ;;  %v577_v14 = vmul.f32 %v1507_v54, %v570_v2  ;;  %v578_v41 = vmul.f32 %v570_v2, %v1528_v7  ;;  %v579_v46 = vmul.f32 %v1523_v3, %v570_v2 }
 0x134   :  { %v623_v45 = vadd.f32 %v1758_v28, %v585_v21  ;;  %v624_v48 = vadd.f32 %v1758_v28, %v586_v23  ;;  %v625_v6 = vadd.f32 %v1758_v28, %v587_v24  ;;  %v639_v1 = vadd.f32 %v1758_v28, %v601_v27 }
 0x135   :  { %v640_v17 = vadd.f32 %v1758_v28, %v602_v30  ;;  %v641_v47 = vadd.f32 %v1758_v28, %v603_v38  ;;  %v580_v21 = vmul.f32 %v570_v2, %v1544_v20  ;;  %v581_v23 = vmul.f32 %v1539_v16, %v570_v2 }
 0x136   :  { %v655_v55 = vmax.f32 %v623_v45, 0.0  ;;  %v656_v36 = vmax.f32 %v624_v48, 0.0  ;;  %v657_v59 = vmax.f32 %v625_v6, 0.0  ;;  %v671_v35 = vmax.f32 %v639_v1, 0.0 }
 0x137   :  { %v672_v61 = vmax.f32 %v640_v17, 0.0  ;;  %v673_v62 = vmax.f32 %v641_v47, 0.0  ;;  %v582_v54 = vmul.f32 %v570_v2, %v1560_v33  ;;  %v583_v58 = vmul.f32 %v1555_v29, %v570_v2 }
 0x138   :  { %694 = vst.msk [vmem:[#allocation2 + $0x81] sm:$0xff] %vm383_vm1, %v656_v36  ;;  %733 = vst.msk [vmem:[#allocation4 + $0x71] sm:$0xff] %vm383_vm1, %v655_v55  ;;  %v584_v24 = vmul.f32 %v570_v2, %v1576_v53  ;;  %v588_v27 = vmul.f32 %v570_v2, %v1494_v44  ;;  %v589_v7 = vmul.f32 %v1487_v40, %v570_v2 }
 0x139   :  { %734 = vst.msk [vmem:[#allocation4 + $0x81] sm:$0xff] %vm383_vm1, %v657_v59  ;;  %753 = vst.msk [vmem:[#allocation5 + $0x71] sm:$0xff] %vm383_vm1, %v671_v35  ;;  %v590_v3 = vmul.f32 %v570_v2, %v1514_v60  ;;  %v591_v20 = vmul.f32 %v1505_v51, %v570_v2  ;;  %v592_v16 = vmul.f32 %v570_v2, %v1546_v22 }
 0x13a   :  { %714 = vst.msk [vmem:[#allocation3 + $0x81] sm:$0xff] %vm383_vm1, %v672_v61  ;;  %754 = vst.msk [vmem:[#allocation5 + $0x81] sm:$0xff] %vm383_vm1, %v673_v62  ;;  %v593_v30 = vmul.f32 %v1530_v9, %v570_v2  ;;  %v594_v38 = vmul.f32 %v570_v2, %v1578_v56  ;;  %v595_v33 = vmul.f32 %v1562_v37, %v570_v2 }
 0x13b   :  { %v596_v29 = vmul.f32 %v570_v2, %v1608_v25  ;;  %v597_v53 = vmul.f32 %v1594_v10, %v570_v2  ;;  %v598_v44 = vmul.f32 %v570_v2, %v1632_v63  ;;  %v599_v40 = vmul.f32 %v1620_v43, %v570_v2 }
 0x13c   :  { %v600_v60 = vmul.f32 %v570_v2, %v1656_v32  ;;  %v610_v51 = vadd.f32 %v1758_v28, %v572_v39  ;;  %v611_v22 = vadd.f32 %v1758_v28, %v573_v42  ;;  %v612_v9 = vadd.f32 %v1758_v28, %v574_v13 }
 0x13d   :  { %v613_v56 = vadd.f32 %v1758_v28, %v575_v57  ;;  %v614_v37 = vadd.f32 %v1758_v28, %v576_v0  ;;  %v615_v25 = vadd.f32 %v1758_v28, %v577_v14  ;;  %v616_v10 = vadd.f32 %v1758_v28, %v578_v41 }
 0x13e   :  { %v617_v63 = vadd.f32 %v1758_v28, %v579_v46  ;;  %v618_v2 = vadd.f32 %v1758_v28, %v580_v21  ;;  %v619_v39 = vadd.f32 %v1758_v28, %v581_v23  ;;  %v620_v42 = vadd.f32 %v1758_v28, %v582_v54 }
 0x13f   :  { %v1810_v43 = vld [vmem:[#allocation4 + $0x71] sm:$0xff]  ;;  %v621_v48 = vadd.f32 %v1758_v28, %v583_v58  ;;  %v622_v17 = vadd.f32 %v1758_v28, %v584_v24  ;;  %v626_v47 = vadd.f32 %v1758_v28, %v588_v27  ;;  %v627_v13 = vadd.f32 %v1758_v28, %v589_v7 }
 0x140   :  { %v1808_v45 = vld [vmem:[#allocation5 + $0x70] sm:$0xff]  ;;  %v804_v1 = vmul.f32 %v1720_v49, %v1810_v43  ;;  %v628_v57 = vadd.f32 %v1758_v28, %v590_v3  ;;  %v1827_v55 = vadd.f32 %v1758_v28, %v591_v20  ;;  %v630_v36 = vadd.f32 %v1758_v28, %v592_v16 }
 0x141   :  { %v1812_v32 = vld [vmem:[#allocation5 + $0x71] sm:$0xff]  ;;  %v776_v6 = vmul.f32 %v1724_v50, %v1808_v45  ;;  %v631_v61 = vadd.f32 %v1758_v28, %v593_v30  ;;  %v632_v62 = vadd.f32 %v1758_v28, %v594_v38  ;;  %v633_v0 = vadd.f32 %v1758_v28, %v595_v33  ;;  %v848_v24 = vld [vmem:[#allocation3 + $0x80] sm:$0xff] }
 0x142   :  { %2122 = vst [vmem:[#allocation10_spill] sm:$0xff] %v1812_v32  ;;  %v832_v35 = vmul.f32 %v1727_v52, %v1812_v32  ;;  %v634_v14 = vadd.f32 %v1758_v28, %v596_v29  ;;  %v635_v41 = vadd.f32 %v1758_v28, %v597_v53  ;;  %v636_v46 = vadd.f32 %v1758_v28, %v598_v44 }
 0x143   :  { %v812_v59 = vadd.f32 %v804_v1, %v776_v6  ;;  %v637_v23 = vadd.f32 %v1758_v28, %v599_v40  ;;  %v642_v54 = vmax.f32 %v610_v51, 0.0  ;;  %v643_v58 = vmax.f32 %v611_v22, 0.0 }
 0x144   :  { %v644_v27 = vmax.f32 %v612_v9, 0.0  ;;  %v645_v7 = vmax.f32 %v613_v56, 0.0  ;;  %v646_v3 = vmax.f32 %v614_v37, 0.0  ;;  %v647_v20 = vmax.f32 %v615_v25, 0.0 }
 0x145   :  { %v840_v21 = vadd.f32 %v832_v35, %v812_v59  ;;  %v638_v16 = vadd.f32 %v1758_v28, %v600_v60  ;;  %v648_v30 = vmax.f32 %v616_v10, 0.0  ;;  %v649_v38 = vmax.f32 %v617_v63, 0.0  ;;  %687 = vst.msk [vmem:[#allocation2 + $0x11] sm:$0xff] %vm383_vm1, %v642_v54  ;;  %727 = vst.msk [vmem:[#allocation4 + $0x11] sm:$0xff] %vm383_vm1, %v643_v58  ;;  %v876_v63 = vld [vmem:[#allocation2 + $0x81] sm:$0xff] }
 0x146   :  { %v650_v33 = vmax.f32 %v618_v2, 0.0  ;;  %v651_v29 = vmax.f32 %v619_v39, 0.0  ;;  %v652_v53 = vmax.f32 %v620_v42, 0.0  ;;  %v653_v44 = vmax.f32 %v621_v48, 0.0  ;;  %688 = vst.msk [vmem:[#allocation2 + $0x21] sm:$0xff] %vm383_vm1, %v644_v27  ;;  %689 = vst.msk [vmem:[#allocation2 + $0x31] sm:$0xff] %vm383_vm1, %v646_v3 }
 0x147   :  { %v654_v40 = vmax.f32 %v622_v17, 0.0  ;;  %728 = vst.msk [vmem:[#allocation4 + $0x21] sm:$0xff] %vm383_vm1, %v645_v7  ;;  %729 = vst.msk [vmem:[#allocation4 + $0x31] sm:$0xff] %vm383_vm1, %v647_v20  ;;  %v860_v28 = vmul.f32 %v1739_v11, %v848_v24  ;;  %v658_v60 = vmax.f32 %v626_v47, 0.0  ;;  %v659_v51 = vmax.f32 %v627_v13, 0.0 }
 0x148   :  { %v660_v22 = vmax.f32 %v628_v57, 0.0  ;;  %690 = vst.msk [vmem:[#allocation2 + $0x41] sm:$0xff] %vm383_vm1, %v648_v30  ;;  %691 = vst.msk [vmem:[#allocation2 + $0x51] sm:$0xff] %vm383_vm1, %v650_v33  ;;  %v661_v9 = vmax.f32 %v1827_v55, 0.0  ;;  %v662_v56 = vmax.f32 %v630_v36, 0.0  ;;  %v663_v37 = vmax.f32 %v631_v61, 0.0 }
 0x149   :  { %730 = vst.msk [vmem:[#allocation4 + $0x41] sm:$0xff] %vm383_vm1, %v649_v38  ;;  %v664_v25 = vmax.f32 %v632_v62, 0.0  ;;  %692 = vst.msk [vmem:[#allocation2 + $0x61] sm:$0xff] %vm383_vm1, %v652_v53  ;;  %v805_v10 = vadd.f32 %v1748_v15, %v1745_v18  ;;  %v665_v2 = vmax.f32 %v633_v0, 0.0  ;;  %v666_v39 = vmax.f32 %v634_v14, 0.0  ;;  %v904_v15 = vld [vmem:[#allocation3 + $0x81] sm:$0xff] }
 0x14a   :  { %693 = vst.msk [vmem:[#allocation2 + $0x71] sm:$0xff] %vm383_vm1, %v654_v40  ;;  %731 = vst.msk [vmem:[#allocation4 + $0x51] sm:$0xff] %vm383_vm1, %v651_v29  ;;  %v667_v42 = vmax.f32 %v635_v41, 0.0  ;;  %v868_v48 = vadd.f32 %v860_v28, %v840_v21  ;;  %v668_v6 = vmax.f32 %v636_v46, 0.0  ;;  %v669_v1 = vmax.f32 %v637_v23, 0.0 }
 0x14b   :  { %732 = vst.msk [vmem:[#allocation4 + $0x61] sm:$0xff] %vm383_vm1, %v653_v44  ;;  %707 = vst.msk [vmem:[#allocation3 + $0x11] sm:$0xff] %vm383_vm1, %v658_v60  ;;  %v670_v17 = vmax.f32 %v638_v16, 0.0  ;;  %v1867_v18 = vrot.slane %v1711_v31, %v963_v4  ;;  %v888_v47 = vmul.f32 %v1735_v5, %v876_v63  ;;  %v1879_v4 = vrot.slane %v1711_v31, %v935_v8 }
 0x14c   :  { %708 = vst.msk [vmem:[#allocation3 + $0x21] sm:$0xff] %vm383_vm1, %v660_v22  ;;  %747 = vst.msk [vmem:[#allocation5 + $0x11] sm:$0xff] %vm383_vm1, %v659_v51  ;;  %v786_v13 = vld [vmem:[#allocation4 + $0x11] sm:$0xff]  ;;  %v1882_v55 = vadd.f32 %v1751_v19, %v805_v10  ;;  %v1889_v62 = vmul.f32 %v1742_v12, %v904_v15 }
 0x14d   :  { %709 = vst.msk [vmem:[#allocation3 + $0x31] sm:$0xff] %vm383_vm1, %v662_v56  ;;  %710 = vst.msk [vmem:[#allocation3 + $0x41] sm:$0xff] %vm383_vm1, %v664_v25  ;;  %v869_v57 = vld [vmem:[#allocation2 + $0x11] sm:$0xff]  ;;  %v870_v35 = vld [vmem:[#allocation2 + $0x21] sm:$0xff]  ;;  %v1886_v61 = vadd.f32 %v888_v47, %v868_v48  ;;  %v798_v14 = vmul.f32 %v1720_v49, %v786_v13  ;;  %v1908_v54 = vmul.f32 %v1867_v18, %v786_v13 }
 0x14e   :  { %748 = vst.msk [vmem:[#allocation5 + $0x21] sm:$0xff] %vm383_vm1, %v661_v9  ;;  %749 = vst.msk [vmem:[#allocation5 + $0x31] sm:$0xff] %vm383_vm1, %v663_v37  ;;  %v787_v36 = vld [vmem:[#allocation4 + $0x21] sm:$0xff]  ;;  %v1884_v59 = vld [vmem:[#allocation4 + $0x31] sm:$0xff]  ;;  %v1895_v31 = vmul.f32 %v1735_v5, %v869_v57  ;;  %v1905_v23 = vmul.f32 %v1735_v5, %v870_v35 }
 0x14f   :  { %711 = vst.msk [vmem:[#allocation3 + $0x51] sm:$0xff] %vm383_vm1, %v666_v39  ;;  %750 = vst.msk [vmem:[#allocation5 + $0x41] sm:$0xff] %vm383_vm1, %v665_v2  ;;  %v871_v26 = vld [vmem:[#allocation2 + $0x31] sm:$0xff]  ;;  %v872_v41 = vld [vmem:[#allocation2 + $0x41] sm:$0xff]  ;;  %v799_v46 = vmul.f32 %v1720_v49, %v787_v36  ;;  %v800_v21 = vmul.f32 %v1720_v49, %v1884_v59  ;;  %v1923_v16 = vmul.f32 %v1867_v18, %v787_v36 }
 0x150   :  { %751 = vst.msk [vmem:[#allocation5 + $0x51] sm:$0xff] %vm383_vm1, %v667_v42  ;;  %712 = vst.msk [vmem:[#allocation3 + $0x61] sm:$0xff] %vm383_vm1, %v668_v6  ;;  %v1891_v0 = vld [vmem:[#allocation4 + $0x41] sm:$0xff]  ;;  %v1917_v3 = vmul.f32 %v1735_v5, %v871_v26  ;;  %v1920_v20 = vmul.f32 %v1735_v5, %v872_v41 }
 0x151   :  { %713 = vst.msk [vmem:[#allocation3 + $0x71] sm:$0xff] %vm383_vm1, %v670_v17  ;;  %752 = vst.msk [vmem:[#allocation5 + $0x61] sm:$0xff] %vm383_vm1, %v669_v1  ;;  %v1897_v8 = vld [vmem:[#allocation4 + $0x51] sm:$0xff]  ;;  %v801_v24 = vmul.f32 %v1720_v49, %v1891_v0 }
 0x152   :  { %v1899_v19 = vld [vmem:[#allocation4 + $0x61] sm:$0xff]  ;;  %v802_v29 = vmul.f32 %v1720_v49, %v1897_v8 }
 0x153   :  { %v1910_v58 = vld [vmem:[#allocation5 + $0x10] sm:$0xff]  ;;  %v803_v53 = vmul.f32 %v1720_v49, %v1899_v19  ;;  %v842_v47 = vld [vmem:[#allocation3 + $0x20] sm:$0xff] }
 0x154   :  { %v1914_v27 = vld [vmem:[#allocation5 + $0x11] sm:$0xff]  ;;  %v770_v33 = vmul.f32 %v1724_v50, %v1910_v58  ;;  %v844_v26 = vld [vmem:[#allocation3 + $0x40] sm:$0xff]  ;;  %v854_v32 = vmul.f32 %v1739_v11, %v842_v47 }
 0x155   :  { %v841_v7 = vld [vmem:[#allocation3 + $0x10] sm:$0xff]  ;;  %v1925_v30 = vld [vmem:[#allocation5 + $0x20] sm:$0xff]  ;;  %v826_v40 = vmul.f32 %v1727_v52, %v1914_v27 }
 0x156   :  { %v1927_v38 = vld [vmem:[#allocation5 + $0x30] sm:$0xff]  ;;  %v1935_v44 = vld [vmem:[#allocation5 + $0x21] sm:$0xff]  ;;  %v771_v51 = vmul.f32 %v1724_v50, %v1925_v30  ;;  %v853_v56 = vmul.f32 %v1739_v11, %v841_v7  ;;  %v806_v63 = vadd.f32 %v798_v14, %v770_v33 }
 0x157   :  { %v1939_v28 = vld [vmem:[#allocation5 + $0x40] sm:$0xff]  ;;  %v1941_v60 = vld [vmem:[#allocation5 + $0x50] sm:$0xff]  ;;  %v772_v22 = vmul.f32 %v1724_v50, %v1927_v38  ;;  %v827_v49 = vmul.f32 %v1727_v52, %v1935_v44 }
 0x158   :  { %v1947_v9 = vld [vmem:[#allocation5 + $0x31] sm:$0xff]  ;;  %v1952_v37 = vld [vmem:[#allocation5 + $0x60] sm:$0xff]  ;;  %v773_v25 = vmul.f32 %v1724_v50, %v1939_v28  ;;  %v774_v10 = vmul.f32 %v1724_v50, %v1941_v60  ;;  %v807_v6 = vadd.f32 %v799_v46, %v771_v51 }
 0x159   :  { %v1958_v2 = vld [vmem:[#allocation5 + $0x41] sm:$0xff]  ;;  %v1960_v39 = vld [vmem:[#allocation5 + $0x51] sm:$0xff]  ;;  %v828_v42 = vmul.f32 %v1727_v52, %v1947_v9  ;;  %v775_v48 = vmul.f32 %v1724_v50, %v1952_v37  ;;  %v808_v1 = vadd.f32 %v800_v21, %v772_v22  ;;  %v834_v21 = vadd.f32 %v826_v40, %v806_v63 }
 0x15a   :  { %2123 = vst [vmem:[#allocation11_spill] sm:$0xff] %v1960_v39  ;;  %v1966_v17 = vld [vmem:[#allocation5 + $0x61] sm:$0xff]  ;;  %v829_v15 = vmul.f32 %v1727_v52, %v1958_v2  ;;  %v843_v13 = vld [vmem:[#allocation3 + $0x30] sm:$0xff]  ;;  %v809_v57 = vadd.f32 %v801_v24, %v773_v25  ;;  %v810_v36 = vadd.f32 %v802_v29, %v774_v10  ;;  %v830_v35 = vmul.f32 %v1727_v52, %v1960_v39 }
 0x15b   :  { %2124 = vst [vmem:[#allocation12_spill] sm:$0xff] %v1966_v17  ;;  %v831_v14 = vmul.f32 %v1727_v52, %v1966_v17  ;;  %v845_v41 = vld [vmem:[#allocation3 + $0x50] sm:$0xff]  ;;  %v846_v50 = vld [vmem:[#allocation3 + $0x60] sm:$0xff]  ;;  %v811_v46 = vadd.f32 %v803_v53, %v775_v48  ;;  %v835_v7 = vadd.f32 %v827_v49, %v807_v6  ;;  %v836_v33 = vadd.f32 %v828_v42, %v808_v1 }
 0x15c   :  { %v847_v51 = vld [vmem:[#allocation3 + $0x70] sm:$0xff]  ;;  %v837_v22 = vadd.f32 %v829_v15, %v809_v57  ;;  %v838_v34 = vadd.f32 %v830_v35, %v810_v36  ;;  %v855_v24 = vmul.f32 %v1739_v11, %v843_v13  ;;  %v873_v29 = vld [vmem:[#allocation2 + $0x51] sm:$0xff]  ;;  %v856_v10 = vmul.f32 %v1739_v11, %v844_v26 }
 0x15d   :  { %v839_v25 = vadd.f32 %v831_v14, %v811_v46  ;;  %v857_v52 = vmul.f32 %v1739_v11, %v845_v41  ;;  %v858_v17 = vmul.f32 %v1739_v11, %v846_v50  ;;  %v874_v39 = vld [vmem:[#allocation2 + $0x61] sm:$0xff]  ;;  %v859_v53 = vmul.f32 %v1739_v11, %v847_v51  ;;  %v875_v42 = vld [vmem:[#allocation2 + $0x71] sm:$0xff] }
 0x15e   :  { %v861_v40 = vadd.f32 %v853_v56, %v1882_v55  ;;  %v862_v49 = vadd.f32 %v854_v32, %v834_v21  ;;  %v863_v63 = vadd.f32 %v855_v24, %v835_v7  ;;  %v864_v48 = vadd.f32 %v856_v10, %v836_v33  ;;  %v897_v47 = vld [vmem:[#allocation3 + $0x11] sm:$0xff]  ;;  %v898_v13 = vld [vmem:[#allocation3 + $0x21] sm:$0xff] }
 0x15f   :  { %v865_v6 = vadd.f32 %v857_v52, %v837_v22  ;;  %v866_v1 = vadd.f32 %v858_v17, %v838_v34  ;;  %v885_v15 = vmul.f32 %v1735_v5, %v873_v29  ;;  %v899_v57 = vld [vmem:[#allocation3 + $0x31] sm:$0xff]  ;;  %v867_v36 = vadd.f32 %v859_v53, %v839_v25  ;;  %v900_v26 = vld [vmem:[#allocation3 + $0x41] sm:$0xff] }
 0x160   :  { %v886_v35 = vmul.f32 %v1735_v5, %v874_v39  ;;  %v889_v14 = vadd.f32 %v1895_v31, %v861_v40  ;;  %v890_v11 = vadd.f32 %v1905_v23, %v862_v49  ;;  %v901_v55 = vld [vmem:[#allocation3 + $0x51] sm:$0xff]  ;;  %v887_v32 = vmul.f32 %v1735_v5, %v875_v42  ;;  %v902_v41 = vld [vmem:[#allocation3 + $0x61] sm:$0xff] }
 0x161   :  { %v891_v56 = vadd.f32 %v1917_v3, %v863_v63  ;;  %v892_v34 = vadd.f32 %v1920_v20, %v864_v48  ;;  %v893_v17 = vadd.f32 %v885_v15, %v865_v6  ;;  %v909_v46 = vmul.f32 %v1742_v12, %v897_v47  ;;  %v903_v7 = vld [vmem:[#allocation3 + $0x71] sm:$0xff] }
 0x162   :  { %v894_v50 = vadd.f32 %v886_v35, %v866_v1  ;;  %v910_v21 = vmul.f32 %v1742_v12, %v898_v13  ;;  %v911_v39 = vmul.f32 %v1742_v12, %v899_v57  ;;  %v895_v31 = vadd.f32 %v887_v32, %v867_v36  ;;  %v1157_v49 = vld [vmem:[%s2112_s4 + $0x8] ss:$0 sm:$0xff]  ;;  %v932_v1 = vld [vmem:[#allocation5 + $0x80] sm:$0xff] }
 0x163   :  { %v912_v23 = vmul.f32 %v1742_v12, %v900_v26  ;;  %v913_v33 = vmul.f32 %v1742_v12, %v901_v55  ;;  %v937_v5 = vmul.f32 %v1879_v4, %v1910_v58  ;;  %v914_v3 = vmul.f32 %v1742_v12, %v902_v41  ;;  %v960_v35 = vld [vmem:[#allocation4 + $0x81] sm:$0xff]  ;;  %v2126_v41 = vld [vmem:[#allocation12_spill] sm:$0xff] }
 0x164   :  { %v917_v20 = vadd.f32 %v909_v46, %v889_v14  ;;  %v918_v51 = vadd.f32 %v910_v21, %v890_v11  ;;  %v919_v22 = vadd.f32 %v911_v39, %v891_v56  ;;  %v938_v25 = vmul.f32 %v1879_v4, %v1925_v30  ;;  %v2125_v56 = vld [vmem:[#allocation11_spill] sm:$0xff] }
 0x165   :  { %v920_v24 = vadd.f32 %v912_v23, %v892_v34  ;;  %v921_v29 = vadd.f32 %v913_v33, %v893_v17  ;;  %v939_v10 = vmul.f32 %v1879_v4, %v1927_v38  ;;  %v915_v52 = vmul.f32 %v1742_v12, %v903_v7 }
 0x166   :  { %v922_v53 = vadd.f32 %v914_v3, %v894_v50  ;;  %v940_v40 = vmul.f32 %v1879_v4, %v1939_v28  ;;  %v945_v58 = vadd.f32 %v937_v5, %v917_v20  ;;  %v941_v63 = vmul.f32 %v1879_v4, %v1941_v60  ;;  %v2127_v5 = vld [vmem:[#allocation10_spill] sm:$0xff] }
 0x167   :  { %v946_v42 = vadd.f32 %v938_v25, %v918_v51  ;;  %v947_v48 = vadd.f32 %v939_v10, %v919_v22  ;;  %v967_v30 = vmul.f32 %v1867_v18, %v1884_v59  ;;  %v923_v38 = vadd.f32 %v915_v52, %v895_v31 }
 0x168   :  { %v942_v12 = vmul.f32 %v1879_v4, %v1952_v37  ;;  %v948_v6 = vadd.f32 %v940_v40, %v920_v24  ;;  %v968_v28 = vmul.f32 %v1867_v18, %v1891_v0  ;;  %v949_v15 = vadd.f32 %v941_v63, %v921_v29 }
 0x169   :  { %v973_v47 = vadd.f32 %v1908_v54, %v945_v58  ;;  %v974_v13 = vadd.f32 %v1923_v16, %v946_v42  ;;  %v975_v60 = vadd.f32 %v967_v30, %v947_v48  ;;  %v924_v57 = vadd.f32 %v1889_v62, %v1886_v61 }
 0x16a   :  { %v943_v59 = vmul.f32 %v1879_v4, %v1808_v45  ;;  %v950_v36 = vadd.f32 %v942_v12, %v922_v53  ;;  %v993_v37 = vmul.f32 %v1157_v49, %v1914_v27  ;;  %v969_v0 = vmul.f32 %v1867_v18, %v1897_v8 }
 0x16b   :  { %v976_v14 = vadd.f32 %v968_v28, %v948_v6  ;;  %v994_v11 = vmul.f32 %v1157_v49, %v1935_v44  ;;  %v995_v54 = vmul.f32 %v1157_v49, %v1947_v9  ;;  %v944_v16 = vmul.f32 %v1879_v4, %v932_v1 }
 0x16c   :  { %v951_v26 = vadd.f32 %v943_v59, %v923_v38  ;;  %v970_v61 = vmul.f32 %v1867_v18, %v1899_v19  ;;  %v2028_v62 = vadd.f32 %v993_v37, %v973_v47  ;;  %v977_v45 = vadd.f32 %v969_v0, %v949_v15 }
 0x16d   :  { %v996_v27 = vmul.f32 %v1157_v49, %v1958_v2  ;;  %v2031_v55 = vadd.f32 %v994_v11, %v974_v13  ;;  %v2033_v32 = vadd.f32 %v995_v54, %v975_v60  ;;  %v952_v8 = vadd.f32 %v944_v16, %v924_v57 }
 0x16e   :  { %v972_v44 = vmul.f32 %v1867_v18, %v960_v35  ;;  %v971_v9 = vmul.f32 %v1867_v18, %v1810_v43  ;;  %v978_v4 = vadd.f32 %v970_v61, %v950_v36  ;;  %v997_v34 = vmul.f32 %v1157_v49, %v2125_v56  ;;  %v988_v18 = vld [vmem:[#allocation5 + $0x81] sm:$0xff] }
 0x16f   :  { %v2039_v17 = vadd.f32 %v996_v27, %v976_v14  ;;  %v1009_v19 = vsel %vm383_vm1, %v2028_v62, 0.0  ;;  %v1010_v2 = vsel %vm383_vm1, %v2031_v55, 0.0  ;;  %v998_v50 = vmul.f32 %v1157_v49, %v2126_v41 }
 0x170   :  { %v1011_v46 = vadd.f32 %v1010_v2, %v1009_v19  ;;  %v1031_v21 = vmul.f32 %v2028_v62, %v2028_v62  ;;  %v1032_v43 = vmul.f32 %v2031_v55, %v2031_v55  ;;  %v979_v39 = vadd.f32 %v971_v9, %v951_v26 }
 0x171   :  { %v2050_v31 = vadd.f32 %v997_v34, %v977_v45  ;;  %v1012_v7 = vsel %vm383_vm1, %v2033_v32, 0.0  ;;  %v1033_v23 = vmul.f32 %v2033_v32, %v2033_v32  ;;  %v980_v33 = vadd.f32 %v972_v44, %v952_v8 }
 0x172   :  { %v999_v3 = vmul.f32 %v1157_v49, %v2127_v5  ;;  %v2057_v20 = vadd.f32 %v998_v50, %v978_v4  ;;  %v1013_v51 = vadd.f32 %v1012_v7, %v1011_v46  ;;  %v1014_v22 = vsel %vm383_vm1, %v2039_v17, 0.0  ;;  %v1066_v7 = vld [vmem:[%s2113_s5] sm:$0x1]  ;;  %s1279_s5 = smov [#allocation6]  }
 0x173   :  { %v1034_v24 = vmul.f32 %v2039_v17, %v2039_v17  ;;  %v1039_v29 = vsel %vm383_vm1, %v1031_v21, 0.0  ;;  %v1040_v25 = vsel %vm383_vm1, %v1032_v43, 0.0  ;;  %v1000_v10 = vmul.f32 %v1157_v49, %v988_v18  ;;  %v1070_v5 = vld [vmem:[%s2114_s6] sm:$0x1]  ;;  %s1114_s28 = sshll.u32 %s1279_s5, 4  ;;  %s1115_s28 = int_to_ptr.vmem [resolvable:$true] %s1114_s28 }
 0x174   :  { %v1015_v52 = vadd.f32 %v1014_v22, %v1013_v51  ;;  %v1041_v53 = vadd.f32 %v1040_v25, %v1039_v29  ;;  %v1007_v40 = vadd.f32 %v999_v3, %v979_v39  ;;  %v1016_v58 = vsel %vm383_vm1, %v2050_v31, 0.0  ;;  %v2128_v51 = vld [vmem:[#allocation9_spill] sm:$0xff]  ;;  %s1256_s6 = scalar_lea.vmem %s1115_s28, 1024  ;;  %p1261_p1 = scmp.lt.s32.totalorder %s1115_s28, %s1115_s28 }
 0x175   :  { %v1035_v63 = vmul.f32 %v2050_v31, %v2050_v31  ;;  %v1042_v42 = vsel %vm383_vm1, %v1033_v23, 0.0  ;;  %v1008_v38 = vadd.f32 %v1000_v10, %v980_v33  ;;  %v1018_v12 = vsel %vm383_vm1, %v2057_v20, 0.0  ;;  %p1257_p0 = scmp.ne.s32.totalorder %s1115_s28, %s1256_s6  ;;  %p1262_p2 = scmp.lt.s32.totalorder %s1256_s6, %s1256_s6 }
 0x176   :  { %v1017_v48 = vadd.f32 %v1016_v58, %v1015_v52  ;;  %v1043_v30 = vadd.f32 %v1042_v42, %v1041_v53  ;;  %v1036_v49 = vmul.f32 %v2057_v20, %v2057_v20  ;;  %v1044_v6 = vsel %vm383_vm1, %v1034_v24, 0.0 }
 0x177   :  { %v1020_v15 = vsel %vm383_vm1, %v1007_v40, 0.0  ;;  %v1037_v47 = vmul.f32 %v1007_v40, %v1007_v40  ;;  %v1046_v13 = vsel %vm383_vm1, %v1035_v63, 0.0  ;;  %v1022_v59 = vsel %vm383_vm1, %v1008_v38, 0.0  ;;  %p1263_p3 = por %p1262_p2, %p1261_p1 }
 0x178   :  { %v1019_v28 = vadd.f32 %v1018_v12, %v1017_v48  ;;  %v1045_v1 = vadd.f32 %v1044_v6, %v1043_v30  ;;  %v1038_v36 = vmul.f32 %v1008_v38, %v1008_v38  ;;  %v1048_v37 = vsel %vm383_vm1, %v1036_v49, 0.0 }
 0x179   :  { %v1050_v14 = vsel %vm383_vm1, %v1037_v47, 0.0  ;;  %p1264_p4 = pnand %p1263_p3, %p1257_p0 }
 0x17a   :  { %v1021_v60 = vadd.f32 %v1020_v15, %v1019_v28  ;;  %v1047_v57 = vadd.f32 %v1046_v13, %v1045_v1  ;;  %v1052_v26 = vsel %vm383_vm1, %v1038_v36, 0.0 }
 0x17c   :  { %v1023_v35 = vadd.f32 %v1022_v59, %v1021_v60  ;;  %v1049_v0 = vadd.f32 %v1048_v37, %v1047_v57 }
 0x17e   :  { %v1024_v11 = vsel %vm383_vm1, %v1023_v35, 0.0  ;;  %v1051_v54 = vadd.f32 %v1050_v14, %v1049_v0 }
 0x17f   :  { %v1025_v16 = vrot.slane %v1024_v11, 4 }
 0x180   :  { %v1053_v61 = vadd.f32 %v1052_v26, %v1051_v54 }
 0x181   :  { %v1026_v45 = vadd.f32 %v1025_v16, %v1024_v11 }
 0x182   :  { %v1054_v27 = vsel %vm383_vm1, %v1053_v61, 0.0 }
 0x183   :  { %v1027_v8 = vrot.slane %v1026_v45, 2  ;;  %v1055_v44 = vrot.slane %v1054_v27, 4 }
 0x185   :  { %v1028_v9 = vadd.f32 %v1027_v8, %v1026_v45  ;;  %v1056_v4 = vadd.f32 %v1055_v44, %v1054_v27 }
 0x187   :  { %v1029_v56 = vrot.slane %v1028_v9, 1  ;;  %v1057_v34 = vrot.slane %v1056_v4, 2 }
 0x189   :  { %v1030_v19 = vadd.f32 %v1029_v56, %v1028_v9  ;;  %v1058_v2 = vadd.f32 %v1057_v34, %v1056_v4 }
 0x18b   :  { %v1059_v41 = vrot.slane %v1058_v2, 1  ;;  %v1062_v50 = vmul.f32 0.015625, %v1030_v19 }
 0x18d   :  { %v1060_v46 = vadd.f32 %v1059_v41, %v1058_v2  ;;  %v1064_v21 = vmul.f32 %v1062_v50, %v1062_v50 }
 0x18f   :  { %v1063_v43 = vmul.f32 0.015625, %v1060_v46 }
 0x191   :  { %v1065_v18 = vsub.f32 %v1063_v43, %v1064_v21 }
 0x193   :  { %v1067_v39 = vadd.f32 0.001, %v1065_v18 }
 0x195   :  { %1254 = vrsqrt.f32 %v1067_v39 }
 0x1a2   :  { %v1255_v23 = vpop.eup %1254 }
 0x1a3   :  { %v1069_v33 = vmul.f32 %v1255_v23, %v1066_v7 }
 0x1a5   :  { %v1071_v3 = vmul.f32 %v1069_v33, %v1062_v50  ;;  %v1077_v22 = vrot.slane %v1069_v33, %v2128_v51 }
 0x1a7   :  { %v1072_v24 = vsub.f32 %v1070_v5, %v1071_v3  ;;  %v1079_v29 = vmul.f32 %v1077_v22, %v2028_v62  ;;  %v1080_v25 = vmul.f32 %v1077_v22, %v2031_v55  ;;  %v1081_v10 = vmul.f32 %v1077_v22, %v2033_v32 }
 0x1a8   :  { %v1082_v52 = vmul.f32 %v1077_v22, %v2039_v17  ;;  %v1083_v58 = vmul.f32 %v1077_v22, %v2050_v31  ;;  %v1084_v63 = vmul.f32 %v1077_v22, %v2057_v20  ;;  %v1085_v42 = vmul.f32 %v1077_v22, %v1007_v40 }
 0x1a9   :  { %v1091_v53 = vrot.slane %v1072_v24, %v2128_v51  ;;  %v1086_v48 = vmul.f32 %v1077_v22, %v1008_v38 }
 0x1ab   :  { %v1093_v30 = vadd.f32 %v1091_v53, %v1079_v29  ;;  %v1094_v12 = vadd.f32 %v1091_v53, %v1080_v25  ;;  %v1095_v49 = vadd.f32 %v1091_v53, %v1081_v10  ;;  %v1096_v62 = vadd.f32 %v1091_v53, %v1082_v52 }
 0x1ac   :  { %v1097_v6 = vadd.f32 %v1091_v53, %v1083_v58  ;;  %v1098_v55 = vadd.f32 %v1091_v53, %v1084_v63  ;;  %v1099_v28 = vadd.f32 %v1091_v53, %v1085_v42  ;;  %v1100_v32 = vadd.f32 %v1091_v53, %v1086_v48 }
 0x1ad   :  { %1101 = vst.msk [vmem:[#allocation6] sm:$0xff] %vm383_vm1, %v1093_v30  ;;  %1102 = vst.msk [vmem:[#allocation6 + $0x8] sm:$0xff] %vm383_vm1, %v1094_v12 }
 0x1ae   :  { %1103 = vst.msk [vmem:[#allocation6 + $0x10] sm:$0xff] %vm383_vm1, %v1095_v49  ;;  %1104 = vst.msk [vmem:[#allocation6 + $0x18] sm:$0xff] %vm383_vm1, %v1096_v62 }
 0x1af   :  { %1105 = vst.msk [vmem:[#allocation6 + $0x20] sm:$0xff] %vm383_vm1, %v1097_v6  ;;  %1106 = vst.msk [vmem:[#allocation6 + $0x28] sm:$0xff] %vm383_vm1, %v1098_v55 }
 0x1b0   :  { %1107 = vst.msk [vmem:[#allocation6 + $0x30] sm:$0xff] %vm383_vm1, %v1099_v28  ;;  %1108 = vst.msk [vmem:[#allocation6 + $0x38] sm:$0xff] %vm383_vm1, %v1100_v32 }
 0x1b1   :  { %1267 = shalt.err (!%p1264_p4)
}
 0x1b2   :  { %s1280_s29 = smov 128   ;;  %s1281_s30 = smov 8  }
 0x1b3   :  { %1120 = dma.vmem_to_hbm [thread:$0]  %s1115_s28, 1024, %s2115_s7, [#allocation7], %s1280_s29, %s1280_s29, %s1281_s30  }
 0x1b4   :  { %1276 = dma.done.wait [#allocation7], 1024  }
 0x1b5   :  { %1277 = vsyncadd [#allocation7], 4294966272 }
 0x1b6   :  { %1124 = vsyncpa [#allocation7], 1 }

</bundles_post_ra>
